<compile_context>
chip_gen: v7x
topology: tpu7x:2x2x1
jax: 0.10.0
libtpu: 0.0.40
codegen_flags: <defaults>
</compile_context>

<pallas_src>
import functools

import jax
import jax.numpy as jnp
from jax.experimental import pallas as pl
from jax.experimental.pallas import tpu as pltpu


def _round_up(v, m):
    return ((v + m - 1) // m) * m


def _rise_kernel(x_ref, wt_ref, b_ref, masks_ref, sal_ref, weff_ref, acc_ref,
                 *, C, HW, scale):
    """One (cl_tile, n_tile) grid step of the fused RISE forward.

    x_ref:     (C, HW)      f32   image, resident (constant index map)
    wt_ref:    (TCL, C*HW)  bf16  transposed classifier weight tile (resident per cl)
    b_ref:     (TCL, 1)     f32   classifier bias tile
    masks_ref: (TN, HW)     bf16  streamed mask tile (double-buffered by Pallas)
    sal_ref:   (TCL, HW)    f32   output saliency tile (written at last n step)
    weff_ref:  (TCL, HW)    bf16  scratch: image folded into weights (built at n == 0)
    acc_ref:   (TCL, HW)    f32   scratch: saliency accumulator across n tiles
    """
    n = pl.program_id(1)

    @pl.when(n == 0)
    def _init():
        # Fold the (single) image into the classifier weights once per cl tile:
        #   weff_t[cl, hw] = sum_c x[c, hw] * w[c*HW + hw, cl]
        # C is small and static; this VPU work runs once, not per mask tile.
        acc = jnp.zeros(weff_ref.shape, jnp.float32)
        for c in range(C):
            x_c = x_ref[pl.ds(c, 1), :]                              # (1, HW) f32
            w_c = wt_ref[:, pl.ds(c * HW, HW)].astype(jnp.float32)   # (TCL, HW)
            acc = acc + x_c * w_c
        weff_ref[...] = acc.astype(jnp.bfloat16)
        acc_ref[...] = jnp.zeros_like(acc_ref)

    masks = masks_ref[...]                                           # (TN, HW) bf16

    # p_t[cl, n] = sum_hw weff_t[cl, hw] * masks[n, hw] + b[cl]
    # (contract last dims of both operands: "A @ B.T" pattern, masks untouched;
    #  the tiny p stays transposed so the sal dot below is a plain MXU dot with
    #  a lane-dense (TCL, HW) output.)
    p_t = jax.lax.dot_general(
        weff_ref[...], masks, (((1,), (1,)), ((), ())),
        preferred_element_type=jnp.float32)                          # (TCL, TN)
    p_t = p_t + b_ref[...]                                           # bias broadcast

    # sal[cl, hw] += sum_n p_t[cl, n] * masks[n, hw]   (masks tile reused, DMA'd once)
    acc_ref[...] += jnp.dot(p_t.astype(jnp.bfloat16), masks,
                            preferred_element_type=jnp.float32)

    @pl.when(n == pl.num_programs(1) - 1)
    def _finalize():
        # Apply 1/(N * p1) exactly once at writeback (not per tile).
        sal_ref[...] = acc_ref[...] * scale


def rise_forward(x, masks, w, b, p1, *, tn=256):
    """x: (1,C,H,W), masks: (N,1,H,W), w: (C*H*W, CL), b: (CL,), p1: float."""
    _, C, H, W = x.shape
    N = masks.shape[0]
    HW = H * W
    CL = w.shape[1]

    # --- MXU / layout friendly padding ------------------------------------
    CL_pad = _round_up(max(CL, 128), 128)        # lane/sublane-dense class dim
    TCL = 256 if CL_pad % 256 == 0 else 128      # v6e/v7x prefer 256-multiples
    TN = _round_up(min(tn, _round_up(N, 8)), 8)  # mask-tile rows (multiple of 8)
    N_pad = _round_up(N, TN)                     # zero-padded masks contribute 0

    x2 = x.reshape(C, HW).astype(jnp.float32)
    # bf16 for the two large MXU operands (masks, weights); f32 accumulation in-kernel.
    m2 = jnp.zeros((N_pad, HW), jnp.bfloat16).at[:N].set(
        masks.reshape(N, HW).astype(jnp.bfloat16))
    # transposed, class-padded weight: wt[cl, c*HW + hw] = w[c*HW + hw, cl]
    wt = jnp.zeros((CL_pad, C * HW), jnp.bfloat16).at[:CL].set(
        w.T.astype(jnp.bfloat16))
    b2 = jnp.zeros((CL_pad, 1), jnp.float32).at[:CL, 0].set(b.astype(jnp.float32))

    scale = 1.0 / (float(N) * float(p1))         # original N, not padded N
    kernel = functools.partial(_rise_kernel, C=C, HW=HW, scale=scale)

    sal_pad = pl.pallas_call(
        kernel,
        out_shape=jax.ShapeDtypeStruct((CL_pad, HW), jnp.float32),
        grid_spec=pltpu.PrefetchScalarGridSpec(
            num_scalar_prefetch=0,
            # (class tiles: parallel / megacore-shardable, mask tiles: reduction)
            grid=(CL_pad // TCL, N_pad // TN),
            in_specs=[
                pl.BlockSpec((C, HW), lambda cl, n: (0, 0)),
                pl.BlockSpec((TCL, C * HW), lambda cl, n: (cl, 0)),
                pl.BlockSpec((TCL, 1), lambda cl, n: (cl, 0)),
                pl.BlockSpec((TN, HW), lambda cl, n: (n, 0)),
            ],
            out_specs=pl.BlockSpec((TCL, HW), lambda cl, n: (cl, 0)),
            scratch_shapes=[
                pltpu.VMEM((TCL, HW), jnp.bfloat16),   # weff (image folded into W)
                pltpu.VMEM((TCL, HW), jnp.float32),    # saliency accumulator
            ],
        ),
        compiler_params=pltpu.CompilerParams(
            dimension_semantics=("parallel", "arbitrary")),
    )(x2, wt, b2, m2)

    return sal_pad[:CL].reshape(CL, H, W)


if __name__ == "__main__":
    # Small shapes consistent with the module: one NCHW image, N RISE masks,
    # CL output classes.
    N, C, H, W, CL = 24, 4, 16, 16, 8
    p1 = 0.2

    key = jax.random.PRNGKey(0)
    k1, k2, k3, k4 = jax.random.split(key, 4)
    x = jax.random.normal(k1, (1, C, H, W), jnp.float32)
    # Synthetic stand-in for generate_masks(): smooth-ish values in [0, 1].
    masks = jax.random.uniform(k2, (N, 1, H, W), jnp.float32)
    # Deterministic synthetic linear-classifier parameters.
    w = jax.random.normal(k3, (C * H * W, CL), jnp.float32) * 0.02
    b = jax.random.normal(k4, (CL,), jnp.float32) * 0.01

    # tn=8 so the small demo exercises multiple reduction-grid steps (24 -> 3 tiles).
    sal = rise_forward(x, masks, w, b, p1, tn=8)
    sal = jax.block_until_ready(sal)

    # Pure-JAX f32 reference of the PyTorch forward semantics.
    stack = masks * x                                     # (N, C, H, W)
    p = stack.reshape(N, -1) @ w + b                      # (N, CL)
    sal_ref = (p.T @ masks.reshape(N, H * W)).reshape(CL, H, W) / N / p1

    assert sal.shape == (CL, H, W)
    # Tolerance reflects the deliberate bf16 quantization of masks/weights in
    # the kernel (MXU accumulation is kept in f32 via preferred_element_type).
    assert jnp.allclose(sal, sal_ref, atol=2e-2, rtol=2e-2), float(
        jnp.max(jnp.abs(sal - sal_ref)))

    print("KERNEL_OK")
</pallas_src>

<mosaic_0001>
module attributes {stable_mosaic.version = 11 : i64} {
  func.func @_rise_kernel(%arg0: i32, %arg1: i32, %arg2: memref<4x256xf32, #tpu.memory_space<vmem>>, %arg3: memref<128x1024xbf16, #tpu.memory_space<vmem>>, %arg4: memref<128x1xf32, #tpu.memory_space<vmem>>, %arg5: memref<8x256xbf16, #tpu.memory_space<vmem>>, %arg6: memref<128x256xf32, #tpu.memory_space<vmem>>, %arg7: memref<128x256xbf16, #tpu.memory_space<vmem>>, %arg8: memref<128x256xf32, #tpu.memory_space<vmem>>) attributes {dimension_semantics = [#tpu.dimension_semantics<parallel>, #tpu.dimension_semantics<arbitrary>], iteration_bounds = array<i64: 1, 3>, scalar_prefetch = 0 : i64, scratch_operands = 2 : i64, tpu.core_type = #tpu.core_type<tc>, window_params = [{pipeline_mode = #tpu.pipeline_mode<synchronous>, transform_indices = @transform_0, window_bounds = array<i64: 4, 256>}, {transform_indices = @transform_1, window_bounds = array<i64: 128, 1024>}, {transform_indices = @transform_2, window_bounds = array<i64: 128, 1>}, {transform_indices = @transform_3, window_bounds = array<i64: 8, 256>}, {transform_indices = @transform_4, window_bounds = array<i64: 128, 256>}]} {
    %c0_i32 = arith.constant 0 : i32
    %0 = arith.cmpi eq, %arg1, %c0_i32 : i32
    %1 = arith.extui %0 : i1 to i32
    %c0_i32_0 = arith.constant 0 : i32
    %2 = arith.cmpi ne, %1, %c0_i32_0 : i32
    scf.if %2 {
      %cst_12 = arith.constant 0.000000e+00 : f32
      %17 = vector.broadcast %cst_12 : f32 to vector<128x256xf32>
      %c0_13 = arith.constant 0 : index
      %c0_14 = arith.constant 0 : index
      %18 = vector.load %arg2[%c0_13, %c0_14] : memref<4x256xf32, #tpu.memory_space<vmem>>, vector<1x256xf32>
      %c0_15 = arith.constant 0 : index
      %c0_16 = arith.constant 0 : index
      %19 = vector.load %arg3[%c0_15, %c0_16] : memref<128x1024xbf16, #tpu.memory_space<vmem>>, vector<128x256xbf16>
      %20 = arith.extf %19 : vector<128x256xbf16> to vector<128x256xf32>
      %21 = vector.broadcast %18 : vector<1x256xf32> to vector<128x256xf32>
      %22 = arith.mulf %21, %20 : vector<128x256xf32>
      %23 = arith.addf %17, %22 : vector<128x256xf32>
      %c1 = arith.constant 1 : index
      %c0_17 = arith.constant 0 : index
      %24 = vector.load %arg2[%c1, %c0_17] : memref<4x256xf32, #tpu.memory_space<vmem>>, vector<1x256xf32>
      %c0_18 = arith.constant 0 : index
      %c256 = arith.constant 256 : index
      %25 = vector.load %arg3[%c0_18, %c256] : memref<128x1024xbf16, #tpu.memory_space<vmem>>, vector<128x256xbf16>
      %26 = arith.extf %25 : vector<128x256xbf16> to vector<128x256xf32>
      %27 = vector.broadcast %24 : vector<1x256xf32> to vector<128x256xf32>
      %28 = arith.mulf %27, %26 : vector<128x256xf32>
      %29 = arith.addf %23, %28 : vector<128x256xf32>
      %c2 = arith.constant 2 : index
      %c0_19 = arith.constant 0 : index
      %30 = vector.load %arg2[%c2, %c0_19] : memref<4x256xf32, #tpu.memory_space<vmem>>, vector<1x256xf32>
      %c0_20 = arith.constant 0 : index
      %c512 = arith.constant 512 : index
      %31 = vector.load %arg3[%c0_20, %c512] : memref<128x1024xbf16, #tpu.memory_space<vmem>>, vector<128x256xbf16>
      %32 = arith.extf %31 : vector<128x256xbf16> to vector<128x256xf32>
      %33 = vector.broadcast %30 : vector<1x256xf32> to vector<128x256xf32>
      %34 = arith.mulf %33, %32 : vector<128x256xf32>
      %35 = arith.addf %29, %34 : vector<128x256xf32>
      %c3 = arith.constant 3 : index
      %c0_21 = arith.constant 0 : index
      %36 = vector.load %arg2[%c3, %c0_21] : memref<4x256xf32, #tpu.memory_space<vmem>>, vector<1x256xf32>
      %c0_22 = arith.constant 0 : index
      %c768 = arith.constant 768 : index
      %37 = vector.load %arg3[%c0_22, %c768] : memref<128x1024xbf16, #tpu.memory_space<vmem>>, vector<128x256xbf16>
      %38 = arith.extf %37 : vector<128x256xbf16> to vector<128x256xf32>
      %39 = vector.broadcast %36 : vector<1x256xf32> to vector<128x256xf32>
      %40 = arith.mulf %39, %38 : vector<128x256xf32>
      %41 = arith.addf %35, %40 : vector<128x256xf32>
      %42 = arith.truncf %41 : vector<128x256xf32> to vector<128x256xbf16>
      %c0_23 = arith.constant 0 : index
      %c0_24 = arith.constant 0 : index
      %43 = vector.load %arg7[%c0_23, %c0_24] : memref<128x256xbf16, #tpu.memory_space<vmem>>, vector<128x256xbf16>
      tpu.vector_store %arg7[%c0_23, %c0_24], %42 {strides = array<i32>} : memref<128x256xbf16, #tpu.memory_space<vmem>>, vector<128x256xbf16>,
      %cst_25 = arith.constant 0.000000e+00 : f32
      %44 = vector.broadcast %cst_25 : f32 to vector<128x256xf32>
      %c0_26 = arith.constant 0 : index
      %c0_27 = arith.constant 0 : index
      %45 = vector.load %arg8[%c0_26, %c0_27] : memref<128x256xf32, #tpu.memory_space<vmem>>, vector<128x256xf32>
      tpu.vector_store %arg8[%c0_26, %c0_27], %44 {strides = array<i32>} : memref<128x256xf32, #tpu.memory_space<vmem>>, vector<128x256xf32>,
    } else {
    }
    %c0 = arith.constant 0 : index
    %c0_1 = arith.constant 0 : index
    %3 = vector.load %arg5[%c0, %c0_1] : memref<8x256xbf16, #tpu.memory_space<vmem>>, vector<8x256xbf16>
    %c0_2 = arith.constant 0 : index
    %c0_3 = arith.constant 0 : index
    %4 = vector.load %arg7[%c0_2, %c0_3] : memref<128x256xbf16, #tpu.memory_space<vmem>>, vector<128x256xbf16>
    %cst = arith.constant dense<0.000000e+00> : vector<128x8xf32>
    %5 = tpu.matmul %4, %3, %cst {dimension_numbers = #tpu.dot_dimension_numbers<[1], [1], [0], [0], [0, 0, 1, 0], [], []>} : vector<128x256xbf16>, vector<8x256xbf16>, vector<128x8xf32> -> vector<128x8xf32>
    %c0_4 = arith.constant 0 : index
    %c0_5 = arith.constant 0 : index
    %6 = vector.load %arg4[%c0_4, %c0_5] : memref<128x1xf32, #tpu.memory_space<vmem>>, vector<128x1xf32>
    %7 = vector.broadcast %6 : vector<128x1xf32> to vector<128x8xf32>
    %8 = arith.addf %5, %7 : vector<128x8xf32>
    %c0_6 = arith.constant 0 : index
    %c0_7 = arith.constant 0 : index
    %9 = vector.load %arg8[%c0_6, %c0_7] : memref<128x256xf32, #tpu.memory_space<vmem>>, vector<128x256xf32>
    %10 = arith.truncf %8 : vector<128x8xf32> to vector<128x8xbf16>
    %cst_8 = arith.constant dense<0.000000e+00> : vector<128x256xf32>
    %11 = tpu.matmul %10, %3, %cst_8 {dimension_numbers = #tpu.dot_dimension_numbers<[1], [0], [0], [1], [0, 0, 1, 1], [], []>} : vector<128x8xbf16>, vector<8x256xbf16>, vector<128x256xf32> -> vector<128x256xf32>
    %12 = arith.addf %9, %11 : vector<128x256xf32>
    %c0_9 = arith.constant 0 : index
    %c0_10 = arith.constant 0 : index
    %13 = vector.load %arg8[%c0_9, %c0_10] : memref<128x256xf32, #tpu.memory_space<vmem>>, vector<128x256xf32>
    tpu.vector_store %arg8[%c0_9, %c0_10], %12 {strides = array<i32>} : memref<128x256xf32, #tpu.memory_space<vmem>>, vector<128x256xf32>,
    %c2_i32 = arith.constant 2 : i32
    %14 = arith.cmpi eq, %arg1, %c2_i32 : i32
    %15 = arith.extui %14 : i1 to i32
    %c0_i32_11 = arith.constant 0 : i32
    %16 = arith.cmpi ne, %15, %c0_i32_11 : i32
    scf.if %16 {
      %c0_12 = arith.constant 0 : index
      %c0_13 = arith.constant 0 : index
      %17 = vector.load %arg8[%c0_12, %c0_13] : memref<128x256xf32, #tpu.memory_space<vmem>>, vector<128x256xf32>
      %cst_14 = arith.constant 0.208333328 : f32
      %18 = vector.broadcast %cst_14 : f32 to vector<128x256xf32>
      %19 = arith.mulf %17, %18 : vector<128x256xf32>
      %c0_15 = arith.constant 0 : index
      %c0_16 = arith.constant 0 : index
      %20 = vector.load %arg6[%c0_15, %c0_16] : memref<128x256xf32, #tpu.memory_space<vmem>>, vector<128x256xf32>
      tpu.vector_store %arg6[%c0_15, %c0_16], %19 {strides = array<i32>} : memref<128x256xf32, #tpu.memory_space<vmem>>, vector<128x256xf32>,
    } else {
    }
    return
  }
  func.func @transform_0(%arg0: i32, %arg1: i32) -> (i32, i32) {
    %c0_i32 = arith.constant 0 : i32
    %c0_i32_0 = arith.constant 0 : i32
    %c0_i32_1 = arith.constant 0 : i32
    return %c0_i32, %c0_i32_0 : i32, i32
  }
  func.func @transform_1(%arg0: i32, %arg1: i32) -> (i32, i32) {
    %c0_i32 = arith.constant 0 : i32
    %c0_i32_0 = arith.constant 0 : i32
    return %arg0, %c0_i32 : i32, i32
  }
  func.func @transform_2(%arg0: i32, %arg1: i32) -> (i32, i32) {
    %c0_i32 = arith.constant 0 : i32
    %c0_i32_0 = arith.constant 0 : i32
    return %arg0, %c0_i32 : i32, i32
  }
  func.func @transform_3(%arg0: i32, %arg1: i32) -> (i32, i32) {
    %c0_i32 = arith.constant 0 : i32
    %c0_i32_0 = arith.constant 0 : i32
    return %arg1, %c0_i32 : i32, i32
  }
  func.func @transform_4(%arg0: i32, %arg1: i32) -> (i32, i32) {
    %c0_i32 = arith.constant 0 : i32
    %c0_i32_0 = arith.constant 0 : i32
    return %arg0, %c0_i32 : i32, i32
  }
}

</mosaic_0001>

<bundles_post_ra>
// kernel: tpu_custom_call.1
= control target key start
LH: loop header
LB: loop body
LE: loop exit
PB: predicated region body
PF: predicated region fallthrough
CT: control target
= control target key end

     0   :  { %9 = vsyncpa [#allocation5], 0  ;;  %s2050_s0 = inlined_call_operand.vmem [shape: f32[4,256], index: 0, kind: input, shape index: {}]   ;;  %s2051_s1 = inlined_call_operand.hbm [shape: bf16[128,1024], index: 1, kind: input, shape index: {}]   ;;  %s2052_s2 = inlined_call_operand.vmem [shape: f32[128,1], index: 2, kind: input, shape index: {}]   ;;  %s2053_s3 = inlined_call_operand.vmem [shape: bf16[24,256], index: 3, kind: input, shape index: {}]   ;;  %s2054_s4 = inlined_call_operand.hbm [shape: f32[128,256], index: 4, kind: output, shape index: {}]  }
   0x1   :  { %10 = vsyncpa [#allocation6], 0  ;;  %s1676_s15 = smov 0   ;;  %s1678_s16 = smov 0  }
   0x2   :  { %s1680_s17 = smov 0  }
   0x3 LB: > { %s1475_s18 = sadd.s32 4294967295, %s1641_s17   ;;  %s25_s19 = sadd.s32 1, %s1637_s16  ;;  %s1641_s17 = sphi %s1680_s17, %s16_s17   ;;  %s1637_s16 = sphi %s1678_s16, %s2065_s16   ;;  %s1633_s15 = sphi %s1676_s15, %s2064_s15  }
   0x4   : > { %p26_p0 = scmp.ge.s32.totalorder %s25_s19, 3  ;;  %p1476_p1 = scmp.ge.s32.totalorder %s1641_s17, 1 }
   0x5   : > { %p158_p2 = scmp.lt.s32.totalorder %s1641_s17, 4  ;;  %p1703_p4 = scmp.eq.s32.totalorder %s1475_s18, 0 }
   0x6   : > { %s2067_s19 = smov (%p26_p0, %s25_s19), 0  ;;  %s1643_s22 = smov [#allocation4]  }
   0x7   : > { %p1697_p3 = pnand %p1476_p1, %p158_p2  ;;  %s177_s23 = sshll.u32 %s1643_s22, 4  ;;  %s178_s23 = int_to_ptr.vmem [resolvable:$true] %s177_s23 }
   0x8   : > { %s2059_s21 = scalar_select %p1703_p4, 1, 0 }
   0x9   : > { %s2058_s20 = scalar_select %p1697_p3, 1, 0 }
   0xa   : > { %p1513_p5 = pneg %p1697_p3  ;;  %s1557_s27 = scalar_lea.hbm %s2051_s1, 8192 }
   0xb   : > { %p1558_p7 = scmp.ne.s32.totalorder %s2051_s1, %s1557_s27  ;;  %p1564_p11 = scmp.lt.u32.totalorder %s1557_s27, %s2051_s1 }
   0xc   : > { %p1711_p6 = pnand %p1703_p4, %p1513_p5 }
   0xe   : > { %p1559_p8 = pneg %p1711_p6 }
  0x10   : > { %p1560_p9 = pnand %p1559_p8, %p1558_p7 }
  0x12   : > { %p1561_p10 = pneg %p1560_p9 }
  0x14   : > { %p1566_p12 = pnand %p1564_p11, %p1561_p10 }
  0x16   : > { %1569 = shalt.err (!%p1566_p12)
}
  0x17   : > { %s1570_s6 = scalar_lea.vmem %s178_s23, 8192  ;;  %p1578_p2 = scmp.lt.s32.totalorder %s178_s23, %s178_s23 }
  0x18   : > { %p1571_p13 = scmp.ne.s32.totalorder %s178_s23, %s1570_s6  ;;  %p1579_p5 = scmp.lt.s32.totalorder %s1570_s6, %s1570_s6 }
  0x1a   : > { %p1573_p0 = pnand %p1571_p13, %p1559_p8  ;;  %p1580_p4 = por %p1579_p5, %p1578_p2 }
  0x1c   : > { %p1574_p1 = pneg %p1573_p0 }
  0x1e   : > { %p1581_p3 = pnand %p1580_p4, %p1574_p1 }
  0x20   : > { %1584 = shalt.err (!%p1581_p3)
}
  0x21   : > { %s1644_s7 = smov 512   ;;  %s1645_s8 = smov 32  }
  0x22   : > { %1516 = dma.hbm_to_vmem [thread:$0]  (!%p1711_p6), %s2051_s1, 8192, %s178_s23, [#allocation5], %s1644_s7, %s1644_s7, %s1645_s8  }
  0x23   : > { %p2061_p7 = scmp.ne.s32.totalorder %s2058_s20, 0 }
  0x24   : > { %p2062_p9 = scmp.ne.s32.totalorder (!%p2061_p7), %s2059_s21, 0 }
  0x25   : > { %210 = sbr.rel (%p2061_p7) target bundleno = 691 (0x2b3), region = 36 }
  0x2c   : > { %1624 = dma.done.wait (%p2062_p9), [#allocation5], 8192  }
  0x2d   : > { %1626 = vsyncadd (%p2062_p9), [#allocation5], 4294959104  ;;  %p243_p3 = scmp.lt.s32.totalorder %s1633_s15, 2  ;;  %p1484_p4 = scmp.ne.s32.totalorder %s1633_s15, 0 }
  0x2e   : > { %v1745_v0 = vld [vmem:[#allocation4] sm:$0xff] (!%p1484_p4)  ;;  %v304_v2 = vlaneseq (!%p1484_p4)  ;;  %v1761_v7 = vld [vmem:[#allocation4 + $0x8] sm:$0xff] (!%p1484_p4)  ;;  %v1646_v11 = vmov (!%p1484_p4), 0.0   ;;  %v505_v16 = vld [vmem:[#allocation4 + $0x10] sm:$0xff] (!%p1484_p4) }
  0x2f   : > { %s244_s11 = scalar_select %p243_p3, %s1633_s15, 2 }
  0x30   : > { %253 = sbr.rel (%p1484_p4) target bundleno = 152 (0x98), region = 44  ;;  %v1747_v1 = vld [vmem:[#allocation4 + $0x20] sm:$0xff] (!%p1484_p4)  ;;  %v271_v4 = vunpack.c.l.bf16 (!%p1484_p4), %v1745_v0  ;;  %v1763_v8 = vld [vmem:[#allocation4 + $0x28] sm:$0xff] (!%p1484_p4)  ;;  %v272_v9 = vunpack.c.h.bf16 (!%p1484_p4), %v1745_v0  ;;  %785 = vst [vmem:[#allocation3] sm:$0xff] (!%p1484_p4), %v1646_v11  ;;  %786 = vst [vmem:[#allocation3 + $0x8] sm:$0xff] (!%p1484_p4), %v1646_v11  ;;  %v305_v12 = vshrl.u32 (!%p1484_p4), %v304_v2, 7  ;;  %v396_v13 = vunpack.c.l.bf16 (!%p1484_p4), %v1761_v7 }
  0x31   : > { %s1504_s12 = sshll.u32 %s244_s11, 3  ;;  %v1752_v3 = vld [vmem:[%s2050_s0] ss:$4 sm:$0x3] (!%p1484_p4)  ;;  %v273_v5 = vunpack.c.l.bf16 (!%p1484_p4), %v1747_v1  ;;  %v274_v10 = vunpack.c.h.bf16 (!%p1484_p4), %v1747_v1  ;;  %787 = vst [vmem:[#allocation3 + $0x10] sm:$0xff] (!%p1484_p4), %v1646_v11  ;;  %788 = vst [vmem:[#allocation3 + $0x18] sm:$0xff] (!%p1484_p4), %v1646_v11  ;;  %v398_v14 = vunpack.c.l.bf16 (!%p1484_p4), %v1763_v8  ;;  %v397_v18 = vunpack.c.h.bf16 (!%p1484_p4), %v1761_v7 }
  0x32   : > { %s1742_s22 = scalar_lea.vmem %s2053_s3, %s1504_s12  ;;  %v1759_v6 = vld [vmem:[%s2050_s0 + $0x1] ss:$4 sm:$0x3] (!%p1484_p4)  ;;  %789 = vst [vmem:[#allocation3 + $0x20] sm:$0xff] (!%p1484_p4), %v1646_v11  ;;  %790 = vst [vmem:[#allocation3 + $0x28] sm:$0xff] (!%p1484_p4), %v1646_v11  ;;  %v506_v17 = vld [vmem:[#allocation4 + $0x30] sm:$0xff] (!%p1484_p4)  ;;  %v521_v19 = vunpack.c.l.bf16 (!%p1484_p4), %v505_v16  ;;  %v399_v24 = vunpack.c.h.bf16 (!%p1484_p4), %v1763_v8  ;;  %v522_v25 = vunpack.c.h.bf16 (!%p1484_p4), %v505_v16 }
  0x33   : > { %791 = vst [vmem:[#allocation3 + $0x30] sm:$0xff] (!%p1484_p4), %v1646_v11  ;;  %792 = vst [vmem:[#allocation3 + $0x38] sm:$0xff] (!%p1484_p4), %v1646_v11  ;;  %v1486_v15 = vld [vmem:[%s2050_s0 + $0x2] ss:$4 sm:$0x3] (!%p1484_p4)  ;;  %v523_v20 = vunpack.c.l.bf16 (!%p1484_p4), %v506_v17  ;;  %v630_v22 = vld [vmem:[#allocation4 + $0x18] sm:$0xff] (!%p1484_p4)  ;;  %v524_v31 = vunpack.c.h.bf16 (!%p1484_p4), %v506_v17 }
  0x34   : > { %793 = vst [vmem:[#allocation3 + $0x40] sm:$0xff] (!%p1484_p4), %v1646_v11  ;;  %794 = vst [vmem:[#allocation3 + $0x48] sm:$0xff] (!%p1484_p4), %v1646_v11  ;;  %v1487_v21 = vld [vmem:[%s2050_s0 + $0x3] ss:$4 sm:$0x3] (!%p1484_p4)  ;;  %v631_v23 = vld [vmem:[#allocation4 + $0x38] sm:$0xff] (!%p1484_p4)  ;;  %v646_v27 = vunpack.c.l.bf16 (!%p1484_p4), %v630_v22  ;;  %v647_v32 = vunpack.c.h.bf16 (!%p1484_p4), %v630_v22 }
  0x35   : > { %795 = vst [vmem:[#allocation3 + $0x50] sm:$0xff] (!%p1484_p4), %v1646_v11  ;;  %796 = vst [vmem:[#allocation3 + $0x58] sm:$0xff] (!%p1484_p4), %v1646_v11  ;;  %v306_v26 = vsub.s32 (!%p1484_p4), 0, %v305_v12  ;;  %v648_v28 = vunpack.c.l.bf16 (!%p1484_p4), %v631_v23  ;;  %v310_v29 = vsub.s32 (!%p1484_p4), 1, %v305_v12  ;;  %v1777_v30 = vld [vmem:[#allocation4 + $0x40] sm:$0xff] (!%p1484_p4)  ;;  %v649_v33 = vunpack.c.h.bf16 (!%p1484_p4), %v631_v23  ;;  %v382_v60 = vld [vmem:[#allocation4 + $0x48] sm:$0xff] (!%p1484_p4) }
  0x36   : > { %797 = vst [vmem:[#allocation3 + $0x60] sm:$0xff] (!%p1484_p4), %v1646_v11  ;;  %798 = vst [vmem:[#allocation3 + $0x68] sm:$0xff] (!%p1484_p4), %v1646_v11  ;;  %v275_v34 = vunpack.c.l.bf16 (!%p1484_p4), %v1777_v30  ;;  %v258_v55 = vld [vmem:[#allocation4 + $0x60] sm:$0xff] (!%p1484_p4)  ;;  %v383_v61 = vld [vmem:[#allocation4 + $0x68] sm:$0xff] (!%p1484_p4) }
  0x37   : > { %799 = vst [vmem:[#allocation3 + $0x70] sm:$0xff] %v1646_v11  ;;  %800 = vst [vmem:[#allocation3 + $0x78] sm:$0xff] %v1646_v11  ;;  %v1781_v35 = vrot.slane %v1752_v3, %v306_v26  ;;  %v1784_v36 = vrot.slane %v1759_v6, %v306_v26  ;;  %v1786_v37 = vrot.slane %v1486_v15, %v306_v26  ;;  %v507_v1 = vld [vmem:[#allocation4 + $0x50] sm:$0xff]  ;;  %v632_v12 = vld [vmem:[#allocation4 + $0x58] sm:$0xff] }
  0x38   : > { %801 = vst [vmem:[#allocation3 + $0x80] sm:$0xff] %v1646_v11  ;;  %802 = vst [vmem:[#allocation3 + $0x88] sm:$0xff] %v1646_v11  ;;  %v1788_v38 = vrot.slane %v1487_v21, %v306_v26  ;;  %v1791_v39 = vrot.slane %v1752_v3, %v310_v29  ;;  %v1794_v40 = vrot.slane %v1759_v6, %v310_v29  ;;  %v508_v7 = vld [vmem:[#allocation4 + $0x70] sm:$0xff]  ;;  %v525_v16 = vunpack.c.l.bf16 %v507_v1  ;;  %v633_v17 = vld [vmem:[#allocation4 + $0x78] sm:$0xff] }
  0x39   : > { %803 = vst [vmem:[#allocation3 + $0x90] sm:$0xff] %v1646_v11  ;;  %804 = vst [vmem:[#allocation3 + $0x98] sm:$0xff] %v1646_v11  ;;  %v1796_v41 = vrot.slane %v1486_v15, %v310_v29  ;;  %v1798_v42 = vrot.slane %v1487_v21, %v310_v29  ;;  %v314_v43 = vmul.f32 %v1781_v35, %v271_v4  ;;  %v527_v21 = vunpack.c.l.bf16 %v508_v7 }
  0x3a   : > { %805 = vst [vmem:[#allocation3 + $0xa0] sm:$0xff] %v1646_v11  ;;  %806 = vst [vmem:[#allocation3 + $0xa8] sm:$0xff] %v1646_v11  ;;  %v316_v44 = vmul.f32 %v1781_v35, %v273_v5  ;;  %v439_v45 = vmul.f32 %v1784_v36, %v396_v13  ;;  %v441_v46 = vmul.f32 %v1784_v36, %v398_v14  ;;  %v277_v5 = vunpack.c.l.bf16 %v258_v55 }
  0x3b   : > { %807 = vst [vmem:[#allocation3 + $0xb0] sm:$0xff] %v1646_v11  ;;  %808 = vst [vmem:[#allocation3 + $0xb8] sm:$0xff] %v1646_v11  ;;  %v564_v47 = vmul.f32 %v1786_v37, %v521_v19  ;;  %v566_v48 = vmul.f32 %v1786_v37, %v523_v20  ;;  %v689_v49 = vmul.f32 %v1788_v38, %v646_v27  ;;  %v652_v29 = vunpack.c.l.bf16 %v633_v17 }
  0x3c   : > { %809 = vst [vmem:[#allocation3 + $0xc0] sm:$0xff] %v1646_v11  ;;  %810 = vst [vmem:[#allocation3 + $0xc8] sm:$0xff] %v1646_v11  ;;  %v691_v50 = vmul.f32 %v1788_v38, %v648_v28  ;;  %v471_v51 = vadd.f32 %v439_v45, %v314_v43  ;;  %v473_v52 = vadd.f32 %v441_v46, %v316_v44  ;;  %v401_v46 = vunpack.c.h.bf16 %v382_v60 }
  0x3d   : > { %811 = vst [vmem:[#allocation3 + $0xd0] sm:$0xff] %v1646_v11  ;;  %812 = vst [vmem:[#allocation3 + $0xd8] sm:$0xff] %v1646_v11  ;;  %v315_v53 = vmul.f32 %v1791_v39, %v272_v9  ;;  %v317_v54 = vmul.f32 %v1791_v39, %v274_v10  ;;  %v440_v56 = vmul.f32 %v1794_v40, %v397_v18  ;;  %v400_v10 = vunpack.c.l.bf16 %v382_v60  ;;  %v384_v60 = vld [vmem:[#allocation4 + $0x88] sm:$0xff] }
  0x3e   : > { %813 = vst [vmem:[#allocation3 + $0xe0] sm:$0xff] %v1646_v11  ;;  %814 = vst [vmem:[#allocation3 + $0xe8] sm:$0xff] %v1646_v11  ;;  %v442_v57 = vmul.f32 %v1794_v40, %v399_v24  ;;  %v565_v58 = vmul.f32 %v1796_v41, %v522_v25  ;;  %v567_v59 = vmul.f32 %v1796_v41, %v524_v31  ;;  %v650_v25 = vunpack.c.l.bf16 %v632_v12 }
  0x3f   : > { %815 = vst [vmem:[#allocation3 + $0xf0] sm:$0xff] %v1646_v11  ;;  %816 = vst [vmem:[#allocation3 + $0xf8] sm:$0xff] %v1646_v11  ;;  %v596_v62 = vadd.f32 %v564_v47, %v471_v51  ;;  %v598_v63 = vadd.f32 %v566_v48, %v473_v52  ;;  %v690_v0 = vmul.f32 %v1798_v42, %v647_v32  ;;  %v402_v11 = vunpack.c.l.bf16 %v383_v61  ;;  %v259_v51 = vld [vmem:[#allocation4 + $0x80] sm:$0xff] }
  0x40   : > { %v692_v2 = vmul.f32 %v1798_v42, %v649_v33  ;;  %v472_v3 = vadd.f32 %v440_v56, %v315_v53  ;;  %v474_v4 = vadd.f32 %v442_v57, %v317_v54  ;;  %v318_v6 = vmul.f32 %v1781_v35, %v275_v34 }
  0x41   : > { %v721_v8 = vadd.f32 %v689_v49, %v596_v62  ;;  %v723_v9 = vadd.f32 %v691_v50, %v598_v63  ;;  %v320_v15 = vmul.f32 %v1781_v35, %v277_v5  ;;  %v443_v19 = vmul.f32 %v1784_v36, %v400_v10  ;;  %v385_v62 = vld [vmem:[#allocation4 + $0xa8] sm:$0xff] }
  0x42   : > { %v597_v13 = vadd.f32 %v565_v58, %v472_v3  ;;  %v599_v14 = vadd.f32 %v567_v59, %v474_v4  ;;  %v445_v20 = vmul.f32 %v1784_v36, %v402_v11  ;;  %v568_v24 = vmul.f32 %v1786_v37, %v525_v16  ;;  %v510_v3 = vld [vmem:[#allocation4 + $0xb0] sm:$0xff] }
  0x43   : > { %v753_v18 = vpack.c.bf16 %v723_v9, %v721_v8  ;;  %v475_v26 = vadd.f32 %v443_v19, %v318_v6  ;;  %v570_v28 = vmul.f32 %v1786_v37, %v527_v21  ;;  %v693_v32 = vmul.f32 %v1788_v38, %v650_v25  ;;  %v634_v8 = vld [vmem:[#allocation4 + $0x98] sm:$0xff] }
  0x44   : > { %v722_v22 = vadd.f32 %v690_v0, %v597_v13  ;;  %v724_v23 = vadd.f32 %v692_v2, %v599_v14  ;;  %v477_v27 = vadd.f32 %v445_v20, %v320_v15  ;;  %v276_v33 = vunpack.c.h.bf16 %v1777_v30  ;;  %v260_v30 = vld [vmem:[#allocation4 + $0xa0] sm:$0xff]  ;;  %v635_v13 = vld [vmem:[#allocation4 + $0xb8] sm:$0xff] }
  0x45   : > { %769 = vst [vmem:[#allocation2] sm:$0xff] %v753_v18  ;;  %v278_v34 = vunpack.c.h.bf16 %v258_v55  ;;  %v600_v43 = vadd.f32 %v568_v24, %v475_v26  ;;  %v695_v45 = vmul.f32 %v1788_v38, %v652_v29  ;;  %v403_v49 = vunpack.c.h.bf16 %v383_v61 }
  0x46   : > { %v754_v31 = vpack.c.bf16 %v724_v23, %v722_v22  ;;  %v602_v44 = vadd.f32 %v570_v28, %v477_v27  ;;  %v319_v47 = vmul.f32 %v1791_v39, %v276_v33  ;;  %v526_v50 = vunpack.c.h.bf16 %v507_v1  ;;  %v509_v1 = vld [vmem:[#allocation4 + $0x90] sm:$0xff] }
  0x47   : > { %v321_v48 = vmul.f32 %v1791_v39, %v278_v34  ;;  %v725_v52 = vadd.f32 %v693_v32, %v600_v43  ;;  %v444_v54 = vmul.f32 %v1794_v40, %v401_v46  ;;  %v528_v56 = vunpack.c.h.bf16 %v508_v7 }
  0x48   : > { %770 = vst [vmem:[#allocation2 + $0x8] sm:$0xff] %v754_v31  ;;  %v727_v53 = vadd.f32 %v695_v45, %v602_v44  ;;  %v446_v55 = vmul.f32 %v1794_v40, %v403_v49  ;;  %v569_v57 = vmul.f32 %v1796_v41, %v526_v50  ;;  %v651_v58 = vunpack.c.h.bf16 %v632_v12 }
  0x49   : > { %v653_v59 = vunpack.c.h.bf16 %v633_v17  ;;  %v476_v0 = vadd.f32 %v444_v54, %v319_v47  ;;  %v571_v61 = vmul.f32 %v1796_v41, %v528_v56  ;;  %v279_v2 = vunpack.c.l.bf16 %v259_v51 }
  0x4a   : > { %v755_v63 = vpack.c.bf16 %v727_v53, %v725_v52  ;;  %v478_v4 = vadd.f32 %v446_v55, %v321_v48  ;;  %v694_v5 = vmul.f32 %v1798_v42, %v651_v58  ;;  %v281_v7 = vunpack.c.l.bf16 %v260_v30  ;;  %v261_v52 = vld [vmem:[#allocation4 + $0xc0] sm:$0xff]  ;;  %v386_v55 = vld [vmem:[#allocation4 + $0xc8] sm:$0xff] }
  0x4b   : > { %v696_v6 = vmul.f32 %v1798_v42, %v653_v59  ;;  %v601_v9 = vadd.f32 %v569_v57, %v476_v0  ;;  %v322_v10 = vmul.f32 %v1781_v35, %v279_v2  ;;  %v404_v11 = vunpack.c.l.bf16 %v384_v60 }
  0x4c   : > { %771 = vst [vmem:[#allocation2 + $0x10] sm:$0xff] %v755_v63  ;;  %v406_v12 = vunpack.c.l.bf16 %v385_v62  ;;  %v603_v14 = vadd.f32 %v571_v61, %v478_v4  ;;  %v324_v15 = vmul.f32 %v1781_v35, %v281_v7  ;;  %v529_v16 = vunpack.c.l.bf16 %v509_v1  ;;  %v511_v63 = vld [vmem:[#allocation4 + $0xd0] sm:$0xff] }
  0x4d   : > { %v531_v17 = vunpack.c.l.bf16 %v510_v3  ;;  %v726_v18 = vadd.f32 %v694_v5, %v601_v9  ;;  %v447_v19 = vmul.f32 %v1784_v36, %v404_v11  ;;  %v654_v21 = vunpack.c.l.bf16 %v634_v8 }
  0x4e   : > { %v449_v20 = vmul.f32 %v1784_v36, %v406_v12  ;;  %v728_v22 = vadd.f32 %v696_v6, %v603_v14  ;;  %v572_v23 = vmul.f32 %v1786_v37, %v529_v16  ;;  %v656_v25 = vunpack.c.l.bf16 %v635_v13 }
  0x4f   : > { %v574_v24 = vmul.f32 %v1786_v37, %v531_v17  ;;  %v479_v26 = vadd.f32 %v447_v19, %v322_v10  ;;  %v697_v28 = vmul.f32 %v1788_v38, %v654_v21  ;;  %v280_v29 = vunpack.c.h.bf16 %v259_v51 }
  0x50   : > { %v481_v27 = vadd.f32 %v449_v20, %v324_v15  ;;  %v756_v31 = vpack.c.bf16 %v728_v22, %v726_v18  ;;  %v699_v32 = vmul.f32 %v1788_v38, %v656_v25  ;;  %v282_v33 = vunpack.c.h.bf16 %v260_v30  ;;  %v262_v30 = vld [vmem:[#allocation4 + $0xe0] sm:$0xff] }
  0x51   : > { %v405_v34 = vunpack.c.h.bf16 %v384_v60  ;;  %v604_v43 = vadd.f32 %v572_v23, %v479_v26  ;;  %v323_v45 = vmul.f32 %v1791_v39, %v280_v29  ;;  %v407_v46 = vunpack.c.h.bf16 %v385_v62  ;;  %v387_v62 = vld [vmem:[#allocation4 + $0xe8] sm:$0xff] }
  0x52   : > { %v606_v44 = vadd.f32 %v574_v24, %v481_v27  ;;  %772 = vst [vmem:[#allocation2 + $0x18] sm:$0xff] %v756_v31  ;;  %v325_v47 = vmul.f32 %v1791_v39, %v282_v33  ;;  %v530_v49 = vunpack.c.h.bf16 %v509_v1  ;;  %v532_v50 = vunpack.c.h.bf16 %v510_v3  ;;  %v512_v3 = vld [vmem:[#allocation4 + $0xf0] sm:$0xff] }
  0x53   : > { %v448_v48 = vmul.f32 %v1794_v40, %v405_v34  ;;  %v729_v53 = vadd.f32 %v697_v28, %v604_v43  ;;  %v450_v54 = vmul.f32 %v1794_v40, %v407_v46  ;;  %v655_v56 = vunpack.c.h.bf16 %v634_v8  ;;  %v636_v8 = vld [vmem:[#allocation4 + $0xd8] sm:$0xff] }
  0x54   : > { %v731_v51 = vadd.f32 %v699_v32, %v606_v44  ;;  %v573_v58 = vmul.f32 %v1796_v41, %v530_v49  ;;  %v575_v59 = vmul.f32 %v1796_v41, %v532_v50  ;;  %v657_v60 = vunpack.c.h.bf16 %v635_v13  ;;  %v637_v13 = vld [vmem:[#allocation4 + $0xf8] sm:$0xff] }
  0x55   : > { %v480_v57 = vadd.f32 %v448_v48, %v323_v45  ;;  %v482_v61 = vadd.f32 %v450_v54, %v325_v47  ;;  %v698_v2 = vmul.f32 %v1798_v42, %v655_v56  ;;  %v283_v1 = vunpack.c.l.bf16 %v261_v52  ;;  %v263_v47 = vld [vmem:[#allocation4 + $0x100] sm:$0xff] }
  0x56   : > { %v757_v0 = vpack.c.bf16 %v731_v51, %v729_v53  ;;  %v700_v5 = vmul.f32 %v1798_v42, %v657_v60  ;;  %v285_v6 = vunpack.c.l.bf16 %v262_v30  ;;  %v408_v7 = vunpack.c.l.bf16 %v386_v55  ;;  %v264_v53 = vld [vmem:[#allocation4 + $0x120] sm:$0xff] }
  0x57   : > { %v605_v4 = vadd.f32 %v573_v58, %v480_v57  ;;  %v607_v9 = vadd.f32 %v575_v59, %v482_v61  ;;  %v326_v10 = vmul.f32 %v1781_v35, %v283_v1  ;;  %v410_v11 = vunpack.c.l.bf16 %v387_v62  ;;  %v389_v57 = vld [vmem:[#allocation4 + $0x128] sm:$0xff] }
  0x58   : > { %773 = vst [vmem:[#allocation2 + $0x20] sm:$0xff] %v757_v0  ;;  %v533_v12 = vunpack.c.l.bf16 %v511_v63  ;;  %v328_v15 = vmul.f32 %v1781_v35, %v285_v6  ;;  %v451_v16 = vmul.f32 %v1784_v36, %v408_v7  ;;  %v535_v17 = vunpack.c.l.bf16 %v512_v3  ;;  %v514_v0 = vld [vmem:[#allocation4 + $0x130] sm:$0xff] }
  0x59   : > { %v730_v14 = vadd.f32 %v698_v2, %v605_v4  ;;  %v732_v18 = vadd.f32 %v700_v5, %v607_v9  ;;  %v453_v19 = vmul.f32 %v1784_v36, %v410_v11  ;;  %v658_v21 = vunpack.c.l.bf16 %v636_v8  ;;  %v638_v4 = vld [vmem:[#allocation4 + $0x118] sm:$0xff] }
  0x5a   : > { %v576_v20 = vmul.f32 %v1786_v37, %v533_v12  ;;  %v483_v22 = vadd.f32 %v451_v16, %v326_v10  ;;  %v578_v23 = vmul.f32 %v1786_v37, %v535_v17  ;;  %v660_v24 = vunpack.c.l.bf16 %v637_v13  ;;  %v639_v9 = vld [vmem:[#allocation4 + $0x138] sm:$0xff] }
  0x5b   : > { %v284_v25 = vunpack.c.h.bf16 %v261_v52  ;;  %v758_v26 = vpack.c.bf16 %v732_v18, %v730_v14  ;;  %v485_v27 = vadd.f32 %v453_v19, %v328_v15  ;;  %v701_v28 = vmul.f32 %v1788_v38, %v658_v21 }
  0x5c   : > { %v286_v29 = vunpack.c.h.bf16 %v262_v30  ;;  %v608_v31 = vadd.f32 %v576_v20, %v483_v22  ;;  %v703_v32 = vmul.f32 %v1788_v38, %v660_v24  ;;  %v409_v34 = vunpack.c.h.bf16 %v386_v55  ;;  %v388_v55 = vld [vmem:[#allocation4 + $0x108] sm:$0xff] }
  0x5d   : > { %v327_v33 = vmul.f32 %v1791_v39, %v284_v25  ;;  %774 = vst [vmem:[#allocation2 + $0x28] sm:$0xff] %v758_v26  ;;  %v610_v43 = vadd.f32 %v578_v23, %v485_v27  ;;  %v411_v45 = vunpack.c.h.bf16 %v387_v62  ;;  %v534_v46 = vunpack.c.h.bf16 %v511_v63  ;;  %v513_v63 = vld [vmem:[#allocation4 + $0x110] sm:$0xff] }
  0x5e   : > { %v329_v44 = vmul.f32 %v1791_v39, %v286_v29  ;;  %v733_v48 = vadd.f32 %v701_v28, %v608_v31  ;;  %v452_v49 = vmul.f32 %v1794_v40, %v409_v34  ;;  %v536_v50 = vunpack.c.h.bf16 %v512_v3 }
  0x5f   : > { %v659_v52 = vunpack.c.h.bf16 %v636_v8  ;;  %v735_v51 = vadd.f32 %v703_v32, %v610_v43  ;;  %v454_v54 = vmul.f32 %v1794_v40, %v411_v45  ;;  %v577_v56 = vmul.f32 %v1796_v41, %v534_v46 }
  0x60   : > { %v661_v30 = vunpack.c.h.bf16 %v637_v13  ;;  %v484_v58 = vadd.f32 %v452_v49, %v327_v33  ;;  %v579_v59 = vmul.f32 %v1796_v41, %v536_v50  ;;  %v287_v62 = vunpack.c.l.bf16 %v263_v47 }
  0x61   : > { %v702_v60 = vmul.f32 %v1798_v42, %v659_v52  ;;  %v759_v61 = vpack.c.bf16 %v735_v51, %v733_v48  ;;  %v486_v2 = vadd.f32 %v454_v54, %v329_v44  ;;  %v289_v3 = vunpack.c.l.bf16 %v264_v53  ;;  %v265_v48 = vld [vmem:[#allocation4 + $0x140] sm:$0xff]  ;;  %v390_v51 = vld [vmem:[#allocation4 + $0x148] sm:$0xff] }
  0x62   : > { %v704_v1 = vmul.f32 %v1798_v42, %v661_v30  ;;  %v609_v5 = vadd.f32 %v577_v56, %v484_v58  ;;  %v330_v6 = vmul.f32 %v1781_v35, %v287_v62  ;;  %v412_v7 = vunpack.c.l.bf16 %v388_v55  ;;  %v515_v58 = vld [vmem:[#allocation4 + $0x150] sm:$0xff] }
  0x63   : > { %v414_v8 = vunpack.c.l.bf16 %v389_v57  ;;  %775 = vst [vmem:[#allocation2 + $0x30] sm:$0xff] %v759_v61  ;;  %v611_v10 = vadd.f32 %v579_v59, %v486_v2  ;;  %v332_v11 = vmul.f32 %v1781_v35, %v289_v3  ;;  %v537_v12 = vunpack.c.l.bf16 %v513_v63 }
  0x64   : > { %v539_v13 = vunpack.c.l.bf16 %v514_v0  ;;  %v734_v14 = vadd.f32 %v702_v60, %v609_v5  ;;  %v455_v15 = vmul.f32 %v1784_v36, %v412_v7  ;;  %v662_v17 = vunpack.c.l.bf16 %v638_v4 }
  0x65   : > { %v457_v16 = vmul.f32 %v1784_v36, %v414_v8  ;;  %v736_v18 = vadd.f32 %v704_v1, %v611_v10  ;;  %v580_v19 = vmul.f32 %v1786_v37, %v537_v12  ;;  %v664_v21 = vunpack.c.l.bf16 %v639_v9 }
  0x66   : > { %v582_v20 = vmul.f32 %v1786_v37, %v539_v13  ;;  %v487_v22 = vadd.f32 %v455_v15, %v330_v6  ;;  %v705_v24 = vmul.f32 %v1788_v38, %v662_v17  ;;  %v288_v25 = vunpack.c.h.bf16 %v263_v47 }
  0x67   : > { %v489_v23 = vadd.f32 %v457_v16, %v332_v11  ;;  %v760_v26 = vpack.c.bf16 %v736_v18, %v734_v14  ;;  %v707_v27 = vmul.f32 %v1788_v38, %v664_v21  ;;  %v290_v28 = vunpack.c.h.bf16 %v264_v53  ;;  %v266_v53 = vld [vmem:[#allocation4 + $0x160] sm:$0xff] }
  0x68   : > { %v413_v29 = vunpack.c.h.bf16 %v388_v55  ;;  %v612_v31 = vadd.f32 %v580_v19, %v487_v22  ;;  %v331_v33 = vmul.f32 %v1791_v39, %v288_v25  ;;  %v415_v34 = vunpack.c.h.bf16 %v389_v57  ;;  %v391_v57 = vld [vmem:[#allocation4 + $0x168] sm:$0xff] }
  0x69   : > { %v614_v32 = vadd.f32 %v582_v20, %v489_v23  ;;  %776 = vst [vmem:[#allocation2 + $0x38] sm:$0xff] %v760_v26  ;;  %v333_v43 = vmul.f32 %v1791_v39, %v290_v28  ;;  %v538_v45 = vunpack.c.h.bf16 %v513_v63  ;;  %v540_v46 = vunpack.c.h.bf16 %v514_v0  ;;  %v516_v0 = vld [vmem:[#allocation4 + $0x170] sm:$0xff] }
  0x6a   : > { %v456_v44 = vmul.f32 %v1794_v40, %v413_v29  ;;  %v737_v49 = vadd.f32 %v705_v24, %v612_v31  ;;  %v458_v50 = vmul.f32 %v1794_v40, %v415_v34  ;;  %v663_v52 = vunpack.c.h.bf16 %v638_v4  ;;  %v640_v4 = vld [vmem:[#allocation4 + $0x158] sm:$0xff] }
  0x6b   : > { %v739_v47 = vadd.f32 %v707_v27, %v614_v32  ;;  %v581_v56 = vmul.f32 %v1796_v41, %v538_v45  ;;  %v583_v30 = vmul.f32 %v1796_v41, %v540_v46  ;;  %v665_v55 = vunpack.c.h.bf16 %v639_v9  ;;  %v641_v9 = vld [vmem:[#allocation4 + $0x178] sm:$0xff] }
  0x6c   : > { %v488_v54 = vadd.f32 %v456_v44, %v331_v33  ;;  %v490_v60 = vadd.f32 %v458_v50, %v333_v43  ;;  %v706_v62 = vmul.f32 %v1798_v42, %v663_v52  ;;  %v291_v63 = vunpack.c.l.bf16 %v265_v48  ;;  %v267_v43 = vld [vmem:[#allocation4 + $0x180] sm:$0xff] }
  0x6d   : > { %v761_v59 = vpack.c.bf16 %v739_v47, %v737_v49  ;;  %v708_v2 = vmul.f32 %v1798_v42, %v665_v55  ;;  %v293_v1 = vunpack.c.l.bf16 %v266_v53  ;;  %v416_v3 = vunpack.c.l.bf16 %v390_v51  ;;  %v268_v49 = vld [vmem:[#allocation4 + $0x1a0] sm:$0xff] }
  0x6e   : > { %v613_v61 = vadd.f32 %v581_v56, %v488_v54  ;;  %v615_v5 = vadd.f32 %v583_v30, %v490_v60  ;;  %v334_v6 = vmul.f32 %v1781_v35, %v291_v63  ;;  %v418_v7 = vunpack.c.l.bf16 %v391_v57  ;;  %v393_v54 = vld [vmem:[#allocation4 + $0x1a8] sm:$0xff] }
  0x6f   : > { %777 = vst [vmem:[#allocation2 + $0x40] sm:$0xff] %v761_v59  ;;  %v541_v8 = vunpack.c.l.bf16 %v515_v58  ;;  %v336_v11 = vmul.f32 %v1781_v35, %v293_v1  ;;  %v459_v12 = vmul.f32 %v1784_v36, %v416_v3  ;;  %v543_v13 = vunpack.c.l.bf16 %v516_v0  ;;  %v518_v59 = vld [vmem:[#allocation4 + $0x1b0] sm:$0xff] }
  0x70   : > { %v738_v10 = vadd.f32 %v706_v62, %v613_v61  ;;  %v740_v14 = vadd.f32 %v708_v2, %v615_v5  ;;  %v461_v15 = vmul.f32 %v1784_v36, %v418_v7  ;;  %v666_v17 = vunpack.c.l.bf16 %v640_v4  ;;  %v642_v61 = vld [vmem:[#allocation4 + $0x198] sm:$0xff] }
  0x71   : > { %v584_v16 = vmul.f32 %v1786_v37, %v541_v8  ;;  %v491_v18 = vadd.f32 %v459_v12, %v334_v6  ;;  %v586_v19 = vmul.f32 %v1786_v37, %v543_v13  ;;  %v668_v20 = vunpack.c.l.bf16 %v641_v9  ;;  %v643_v5 = vld [vmem:[#allocation4 + $0x1b8] sm:$0xff] }
  0x72   : > { %v292_v21 = vunpack.c.h.bf16 %v265_v48  ;;  %v762_v22 = vpack.c.bf16 %v740_v14, %v738_v10  ;;  %v493_v23 = vadd.f32 %v461_v15, %v336_v11  ;;  %v709_v24 = vmul.f32 %v1788_v38, %v666_v17 }
  0x73   : > { %v294_v25 = vunpack.c.h.bf16 %v266_v53  ;;  %v616_v26 = vadd.f32 %v584_v16, %v491_v18  ;;  %v711_v27 = vmul.f32 %v1788_v38, %v668_v20  ;;  %v417_v29 = vunpack.c.h.bf16 %v390_v51  ;;  %v392_v51 = vld [vmem:[#allocation4 + $0x188] sm:$0xff] }
  0x74   : > { %v335_v28 = vmul.f32 %v1791_v39, %v292_v21  ;;  %778 = vst [vmem:[#allocation2 + $0x48] sm:$0xff] %v762_v22  ;;  %v618_v31 = vadd.f32 %v586_v19, %v493_v23  ;;  %v419_v33 = vunpack.c.h.bf16 %v391_v57  ;;  %v542_v34 = vunpack.c.h.bf16 %v515_v58  ;;  %v517_v58 = vld [vmem:[#allocation4 + $0x190] sm:$0xff] }
  0x75   : > { %v337_v32 = vmul.f32 %v1791_v39, %v294_v25  ;;  %v741_v44 = vadd.f32 %v709_v24, %v616_v26  ;;  %v460_v45 = vmul.f32 %v1794_v40, %v417_v29  ;;  %v544_v46 = vunpack.c.h.bf16 %v516_v0 }
  0x76   : > { %v667_v48 = vunpack.c.h.bf16 %v640_v4  ;;  %v743_v47 = vadd.f32 %v711_v27, %v618_v31  ;;  %v462_v50 = vmul.f32 %v1794_v40, %v419_v33  ;;  %v585_v52 = vmul.f32 %v1796_v41, %v542_v34 }
  0x77   : > { %v669_v53 = vunpack.c.h.bf16 %v641_v9  ;;  %v492_v56 = vadd.f32 %v460_v45, %v335_v28  ;;  %v587_v30 = vmul.f32 %v1796_v41, %v544_v46  ;;  %v295_v57 = vunpack.c.l.bf16 %v267_v43 }
  0x78   : > { %v710_v55 = vmul.f32 %v1798_v42, %v667_v48  ;;  %v763_v60 = vpack.c.bf16 %v743_v47, %v741_v44  ;;  %v494_v62 = vadd.f32 %v462_v50, %v337_v32  ;;  %v297_v0 = vunpack.c.l.bf16 %v268_v49  ;;  %v269_v44 = vld [vmem:[#allocation4 + $0x1c0] sm:$0xff]  ;;  %v394_v47 = vld [vmem:[#allocation4 + $0x1c8] sm:$0xff] }
  0x79   : > { %v712_v63 = vmul.f32 %v1798_v42, %v669_v53  ;;  %v617_v2 = vadd.f32 %v585_v52, %v492_v56  ;;  %v338_v1 = vmul.f32 %v1781_v35, %v295_v57  ;;  %v420_v3 = vunpack.c.l.bf16 %v392_v51  ;;  %v519_v56 = vld [vmem:[#allocation4 + $0x1d0] sm:$0xff] }
  0x7a   : > { %v422_v4 = vunpack.c.l.bf16 %v393_v54  ;;  %779 = vst [vmem:[#allocation2 + $0x50] sm:$0xff] %v763_v60  ;;  %v619_v6 = vadd.f32 %v587_v30, %v494_v62  ;;  %v340_v7 = vmul.f32 %v1781_v35, %v297_v0  ;;  %v545_v8 = vunpack.c.l.bf16 %v517_v58 }
  0x7b   : > { %v547_v9 = vunpack.c.l.bf16 %v518_v59  ;;  %v742_v10 = vadd.f32 %v710_v55, %v617_v2  ;;  %v463_v11 = vmul.f32 %v1784_v36, %v420_v3  ;;  %v670_v13 = vunpack.c.l.bf16 %v642_v61 }
  0x7c   : > { %v465_v12 = vmul.f32 %v1784_v36, %v422_v4  ;;  %v744_v14 = vadd.f32 %v712_v63, %v619_v6  ;;  %v588_v15 = vmul.f32 %v1786_v37, %v545_v8  ;;  %v672_v17 = vunpack.c.l.bf16 %v643_v5 }
  0x7d   : > { %v590_v16 = vmul.f32 %v1786_v37, %v547_v9  ;;  %v495_v18 = vadd.f32 %v463_v11, %v338_v1  ;;  %v713_v20 = vmul.f32 %v1788_v38, %v670_v13  ;;  %v296_v21 = vunpack.c.h.bf16 %v267_v43 }
  0x7e   : > { %v497_v19 = vadd.f32 %v465_v12, %v340_v7  ;;  %v764_v22 = vpack.c.bf16 %v744_v14, %v742_v10  ;;  %v715_v23 = vmul.f32 %v1788_v38, %v672_v17  ;;  %v298_v24 = vunpack.c.h.bf16 %v268_v49  ;;  %v270_v49 = vld [vmem:[#allocation4 + $0x1e0] sm:$0xff] }
  0x7f   : > { %v421_v25 = vunpack.c.h.bf16 %v392_v51  ;;  %v620_v26 = vadd.f32 %v588_v15, %v495_v18  ;;  %v339_v28 = vmul.f32 %v1791_v39, %v296_v21  ;;  %v423_v29 = vunpack.c.h.bf16 %v393_v54  ;;  %v395_v54 = vld [vmem:[#allocation4 + $0x1e8] sm:$0xff] }
  0x80   : > { %v622_v27 = vadd.f32 %v590_v16, %v497_v19  ;;  %780 = vst [vmem:[#allocation2 + $0x58] sm:$0xff] %v764_v22  ;;  %v341_v31 = vmul.f32 %v1791_v39, %v298_v24  ;;  %v546_v33 = vunpack.c.h.bf16 %v517_v58  ;;  %v548_v34 = vunpack.c.h.bf16 %v518_v59  ;;  %v520_v59 = vld [vmem:[#allocation4 + $0x1f0] sm:$0xff] }
  0x81   : > { %v464_v32 = vmul.f32 %v1794_v40, %v421_v25  ;;  %v745_v45 = vadd.f32 %v713_v20, %v620_v26  ;;  %v466_v46 = vmul.f32 %v1794_v40, %v423_v29  ;;  %v671_v48 = vunpack.c.h.bf16 %v642_v61  ;;  %v644_v61 = vld [vmem:[#allocation4 + $0x1d8] sm:$0xff] }
  0x82   : > { %v747_v43 = vadd.f32 %v715_v23, %v622_v27  ;;  %v589_v52 = vmul.f32 %v1796_v41, %v546_v33  ;;  %v591_v53 = vmul.f32 %v1796_v41, %v548_v34  ;;  %v673_v51 = vunpack.c.h.bf16 %v643_v5  ;;  %v645_v5 = vld [vmem:[#allocation4 + $0x1f8] sm:$0xff] }
  0x83   : > { %v496_v50 = vadd.f32 %v464_v32, %v339_v28  ;;  %v498_v55 = vadd.f32 %v466_v46, %v341_v31  ;;  %v714_v57 = vmul.f32 %v1798_v42, %v671_v48  ;;  %v299_v58 = vunpack.c.l.bf16 %v269_v44 }
  0x84   : > { %v765_v30 = vpack.c.bf16 %v747_v43, %v745_v45  ;;  %v716_v62 = vmul.f32 %v1798_v42, %v673_v51  ;;  %v301_v63 = vunpack.c.l.bf16 %v270_v49  ;;  %v424_v0 = vunpack.c.l.bf16 %v394_v47 }
  0x85   : > { %v621_v60 = vadd.f32 %v589_v52, %v496_v50  ;;  %v623_v2 = vadd.f32 %v591_v53, %v498_v55  ;;  %v342_v1 = vmul.f32 %v1781_v35, %v299_v58  ;;  %v426_v3 = vunpack.c.l.bf16 %v395_v54 }
  0x86   : > { %781 = vst [vmem:[#allocation2 + $0x60] sm:$0xff] %v765_v30  ;;  %v549_v4 = vunpack.c.l.bf16 %v519_v56  ;;  %v344_v7 = vmul.f32 %v1781_v35, %v301_v63  ;;  %v467_v8 = vmul.f32 %v1784_v36, %v424_v0  ;;  %v551_v9 = vunpack.c.l.bf16 %v520_v59 }
  0x87   : > { %v746_v6 = vadd.f32 %v714_v57, %v621_v60  ;;  %v748_v10 = vadd.f32 %v716_v62, %v623_v2  ;;  %v469_v11 = vmul.f32 %v1784_v36, %v426_v3  ;;  %v674_v13 = vunpack.c.l.bf16 %v644_v61 }
  0x88   : > { %v592_v12 = vmul.f32 %v1786_v37, %v549_v4  ;;  %v499_v14 = vadd.f32 %v467_v8, %v342_v1  ;;  %v594_v15 = vmul.f32 %v1786_v37, %v551_v9  ;;  %v676_v16 = vunpack.c.l.bf16 %v645_v5 }
  0x89   : > { %v300_v17 = vunpack.c.h.bf16 %v269_v44  ;;  %v766_v18 = vpack.c.bf16 %v748_v10, %v746_v6  ;;  %v501_v19 = vadd.f32 %v469_v11, %v344_v7  ;;  %v717_v20 = vmul.f32 %v1788_v38, %v674_v13 }
  0x8a   : > { %v302_v21 = vunpack.c.h.bf16 %v270_v49  ;;  %v624_v35 = vadd.f32 %v592_v12, %v499_v14  ;;  %v719_v22 = vmul.f32 %v1788_v38, %v676_v16  ;;  %v425_v24 = vunpack.c.h.bf16 %v394_v47 }
  0x8b   : > { %v343_v23 = vmul.f32 %v1791_v39, %v300_v17  ;;  %782 = vst [vmem:[#allocation2 + $0x68] sm:$0xff] %v766_v18  ;;  %v626_v36 = vadd.f32 %v594_v15, %v501_v19  ;;  %v427_v26 = vunpack.c.h.bf16 %v395_v54  ;;  %v550_v27 = vunpack.c.h.bf16 %v519_v56 }
  0x8c   : > { %v345_v25 = vmul.f32 %v1791_v39, %v302_v21  ;;  %v749_v37 = vadd.f32 %v717_v20, %v624_v35  ;;  %v468_v28 = vmul.f32 %v1794_v40, %v425_v24  ;;  %v552_v29 = vunpack.c.h.bf16 %v520_v59 }
  0x8d   : > { %v675_v31 = vunpack.c.h.bf16 %v644_v61  ;;  %v751_v32 = vadd.f32 %v719_v22, %v626_v36  ;;  %v470_v33 = vmul.f32 %v1794_v40, %v427_v26  ;;  %v593_v34 = vmul.f32 %v1796_v41, %v550_v27 }
  0x8e   : > { %v677_v38 = vunpack.c.h.bf16 %v645_v5  ;;  %v500_v44 = vadd.f32 %v468_v28, %v343_v23  ;;  %v595_v45 = vmul.f32 %v1796_v41, %v552_v29 }
  0x8f   : > { %v718_v43 = vmul.f32 %v1798_v42, %v675_v31  ;;  %v767_v46 = vpack.c.bf16 %v751_v32, %v749_v37  ;;  %v502_v39 = vadd.f32 %v470_v33, %v345_v25 }
  0x90   : > { %v720_v48 = vmul.f32 %v1798_v42, %v677_v38  ;;  %v625_v49 = vadd.f32 %v593_v34, %v500_v44 }
  0x91   : > { %783 = vst [vmem:[#allocation2 + $0x70] sm:$0xff] %v767_v46  ;;  %v627_v47 = vadd.f32 %v595_v45, %v502_v39 }
  0x92   : > { %v750_v50 = vadd.f32 %v718_v43, %v625_v49 }
  0x93   : > { %v752_v52 = vadd.f32 %v720_v48, %v627_v47 }
  0x95   : > { %v768_v53 = vpack.c.bf16 %v752_v52, %v750_v50 }
  0x97   : > { %784 = vst [vmem:[#allocation2 + $0x78] sm:$0xff] %v768_v53 }
  0x98 PF: > { %v817_v40 = vld [vmem:[%s1742_s22] sm:$0xff]  ;;  %v819_v51 = vld [vmem:[#allocation2 + $0x8] sm:$0xff]  ;;  %v1647_v56 = vmov 0   ;;  %v836_v30 = vld [vmem:[%s2052_s2 + $0x10] sm:$0xff]  ;;  %vm1099_vm0 = vcmask 1043456   ;;  %vm1074_vm1 = vcmask 64512  }
  0x99   : > { %v1938_v54 = vcombine.high %v817_v40, %v817_v40  ;;  %v1940_v41 = vcombine.low %v817_v40, %v817_v40  ;;  %969 = vmatprep.mubr.bf16.mxu0 %v819_v51  ;;  %1553 = vset.pattern.permute.xlu0 %v1647_v56  ;;  %v834_v42 = vld [vmem:[%s2052_s2] sm:$0xff]  ;;  %v835_v55 = vld [vmem:[%s2052_s2 + $0x8] sm:$0xff]  ;;  %v837_v58 = vld [vmem:[%s2052_s2 + $0x18] sm:$0xff]  ;;  %p1499_p6 = scmp.ne.s32.totalorder %s1633_s15, 2 }
  0x9a   : > { %1554 = vset.pattern.permute.xlu1 %v1647_v56  ;;  %1138 = vmatprep.mubr.bf16.mxu1 %v1647_v56  ;;  %v818_v57 = vld [vmem:[#allocation2] sm:$0xff]  ;;  %v821_v59 = vld [vmem:[#allocation2 + $0x18] sm:$0xff]  ;;  %v839_v62 = vld [vmem:[%s2052_s2 + $0x28] sm:$0xff] }
  0x9b   : > { %937 = vmatprep.subr.bf16.mxu0 %v1938_v54  ;;  %852 = vperm.xlu0 %1553, %v834_v42   ;;  %v838_v60 = vld [vmem:[%s2052_s2 + $0x20] sm:$0xff]  ;;  %v840_v63 = vld [vmem:[%s2052_s2 + $0x30] sm:$0xff]  ;;  %v841_v61 = vld [vmem:[%s2052_s2 + $0x38] sm:$0xff]  ;;  %v1101_v21 = vsel %vm1099_vm0, %v1940_v41, 0 }
  0x9c   : > { %938 = vmatpush1.bf16.xpose.msra.mxu0 %v1940_v41  ;;  %862 = vperm.xlu1 %1554, %v836_v30   ;;  %v820_v0 = vld [vmem:[#allocation2 + $0x10] sm:$0xff]  ;;  %v823_v2 = vld [vmem:[#allocation2 + $0x28] sm:$0xff]  ;;  %v842_v1 = vld [vmem:[%s2052_s2 + $0x40] sm:$0xff] }
  0x9d   : > { %v843_v3 = vld [vmem:[%s2052_s2 + $0x48] sm:$0xff]  ;;  %v844_v4 = vld [vmem:[%s2052_s2 + $0x50] sm:$0xff]  ;;  %v822_v5 = vld [vmem:[#allocation2 + $0x20] sm:$0xff]  ;;  %1490 = vmatprep.subr.msk.bf16.mxu1 %vm1099_vm0, %v1938_v54 }
  0x9e   : > { %v845_v6 = vld [vmem:[%s2052_s2 + $0x58] sm:$0xff]  ;;  %v846_v8 = vld [vmem:[%s2052_s2 + $0x60] sm:$0xff]  ;;  %v847_v9 = vld [vmem:[%s2052_s2 + $0x68] sm:$0xff]  ;;  %1107 = vmatpush1.bf16.msra.mxu1 %v1101_v21 }
  0x9f   : > { %857 = vperm.xlu0 %1553, %v835_v55   ;;  %v825_v7 = vld [vmem:[#allocation2 + $0x38] sm:$0xff]  ;;  %v848_v10 = vld [vmem:[%s2052_s2 + $0x70] sm:$0xff]  ;;  %v827_v13 = vld [vmem:[#allocation2 + $0x48] sm:$0xff] }
  0xa0   : > { %867 = vperm.xlu1 %1554, %v837_v58   ;;  %v824_v11 = vld [vmem:[#allocation2 + $0x30] sm:$0xff]  ;;  %v849_v12 = vld [vmem:[%s2052_s2 + $0x78] sm:$0xff]  ;;  %v826_v14 = vld [vmem:[#allocation2 + $0x40] sm:$0xff] }
  0xa1   : > { %v829_v15 = vld [vmem:[#allocation2 + $0x58] sm:$0xff]  ;;  %v828_v16 = vld [vmem:[#allocation2 + $0x50] sm:$0xff]  ;;  %v831_v17 = vld [vmem:[#allocation2 + $0x68] sm:$0xff] }
  0xa2   : > { %v830_v18 = vld [vmem:[#allocation2 + $0x60] sm:$0xff]  ;;  %v833_v19 = vld [vmem:[#allocation2 + $0x78] sm:$0xff]  ;;  %v832_v20 = vld [vmem:[#allocation2 + $0x70] sm:$0xff] }
  0xa3   : > { %970 = vmatmul.mubr.bf16.vlgmr.msra.gmra.mrb[0].mxu0 %v818_v57  ;;  %872 = vperm.xlu0 %1553, %v838_v60  }
  0xa4   : > { %977 = vmatprep.mubr.bf16.mxu0 %v821_v59  ;;  %877 = vperm.xlu1 %1554, %v839_v62  }
  0xa7   : > { %882 = vperm.xlu0 %1553, %v840_v63  }
  0xa8   : > { %887 = vperm.xlu1 %1554, %v841_v61  }
  0xab   : > { %978 = vmatmul.mubr.bf16.gmra.mrb[4].mxu0 %v820_v0  ;;  %892 = vperm.xlu0 %1553, %v842_v1  }
  0xac   : > { %985 = vmatprep.mubr.bf16.mxu0 %v823_v2  ;;  %897 = vperm.xlu1 %1554, %v843_v3  }
  0xaf   : > { %902 = vperm.xlu0 %1553, %v844_v4  }
  0xb0   : > { %907 = vperm.xlu1 %1554, %v845_v6  }
  0xb3   : > { %986 = vmatmul.mubr.bf16.gmra.mrb[8].mxu0 %v822_v5  ;;  %912 = vperm.xlu0 %1553, %v846_v8  }
  0xb4   : > { %993 = vmatprep.mubr.bf16.mxu0 %v825_v7  ;;  %917 = vperm.xlu1 %1554, %v847_v9  }
  0xb7   : > { %922 = vperm.xlu0 %1553, %v848_v10  }
  0xb8   : > { %927 = vperm.xlu1 %1554, %v849_v12  }
  0xbb   : > { %994 = vmatmul.mubr.bf16.gmra.mrb[12].mxu0 %v824_v11 }
  0xbc   : > { %1001 = vmatprep.mubr.bf16.mxu0 %v827_v13 }
  0xc3   : > { %1002 = vmatmul.mubr.bf16.gmra.mrb[16].mxu0 %v826_v14 }
  0xc4   : > { %1009 = vmatprep.mubr.bf16.mxu0 %v829_v15 }
  0xcb   : > { %1010 = vmatmul.mubr.bf16.gmra.mrb[20].mxu0 %v828_v16 }
  0xcc   : > { %1017 = vmatprep.mubr.bf16.mxu0 %v831_v17 }
  0xd3   : > { %1018 = vmatmul.mubr.bf16.gmra.mrb[24].mxu0 %v830_v18 }
  0xd4   : > { %1025 = vmatprep.mubr.bf16.mxu0 %v833_v19 }
  0xdb   : > { %1026 = vmatmul.mubr.bf16.gmra.mrb[28].mxu0 %v832_v20 }
 0x11a   : > { %v853_v35 = vpop.permute.xlu0 %852 }
 0x11b   : > { %v863_v37 = vpop.permute.xlu1 %862 }
 0x11e   : > { %v858_v24 = vpop.permute.xlu0 %857 }
 0x11f   : > { %v868_v32 = vpop.permute.xlu1 %867 }
 0x122   : > { %v873_v46 = vpop.permute.xlu0 %872 }
 0x123   : > { %v878_v48 = vpop.permute.xlu1 %877 }
 0x126   : > { %v883_v51 = vpop.permute.xlu0 %882 }
 0x127   : > { %v888_v41 = vpop.permute.xlu1 %887 }
 0x12a   : > { %v893_v60 = vpop.permute.xlu0 %892 }
 0x12b   : > { %v898_v63 = vpop.permute.xlu1 %897 }
 0x12e   : > { %v903_v5 = vpop.permute.xlu0 %902 }
 0x12f   : > { %v908_v7 = vpop.permute.xlu1 %907 }
 0x132   : > { %v913_v14 = vpop.permute.xlu0 %912 }
 0x133   : > { %v918_v16 = vpop.permute.xlu1 %917 }
 0x176   : > { %v971_v22 = vpop.f32.mrb[0].mxu0 }
 0x177   : > { %v973_v23 = vpop.f32.mrb[1].mxu0  ;;  %v972_v25 = vadd.f32 %v971_v22, %v853_v35  ;;  %v923_v22 = vpop.permute.xlu0 %922 }
 0x178   : > { %v974_v36 = vpop.f32.mrb[2].mxu0 }
 0x179   : > { %v975_v26 = vadd.f32 %v974_v36, %v858_v24  ;;  %v976_v27 = vpop.f32.mrb[3].mxu0  ;;  %v928_v24 = vpop.permute.xlu1 %927 }
 0x17b   : > { %v1066_v28 = vpack.c.bf16 %v975_v26, %v972_v25 }
 0x17d   : > { %1491 = vmatmul.mubr.msk.bf16.vlgmr.msra.gmra.mrb[0].mxu1 %vm1074_vm1, %v1066_v28  ;;  %v1034_v28 = vld [vmem:[#allocation3] sm:$0xff] }
 0x17e   : > { %v979_v29 = vpop.f32.mrb[4].mxu0  ;;  %1148 = vmatprep.mubr.bf16.mxu1 %v1647_v56 }
 0x17f   : > { %v981_v31 = vpop.f32.mrb[5].mxu0  ;;  %v980_v34 = vadd.f32 %v979_v29, %v863_v37  ;;  %v1035_v29 = vld [vmem:[#allocation3 + $0x8] sm:$0xff] }
 0x180   : > { %v982_v33 = vpop.f32.mrb[6].mxu0 }
 0x181   : > { %v983_v38 = vadd.f32 %v982_v33, %v868_v32  ;;  %v984_v44 = vpop.f32.mrb[7].mxu0  ;;  %v1036_v32 = vld [vmem:[#allocation3 + $0x10] sm:$0xff] }
 0x183   : > { %v1067_v45 = vpack.c.bf16 %v983_v38, %v980_v34  ;;  %v1037_v38 = vld [vmem:[#allocation3 + $0x18] sm:$0xff] }
 0x185   : > { %1492 = vmatmul.mubr.msk.bf16.gmra.mrb[4].mxu1 %vm1074_vm1, %v1067_v45 }
 0x186   : > { %v987_v43 = vpop.f32.mrb[8].mxu0  ;;  %1158 = vmatprep.mubr.bf16.mxu1 %v1647_v56 }
 0x187   : > { %v989_v39 = vpop.f32.mrb[9].mxu0  ;;  %v988_v47 = vadd.f32 %v987_v43, %v873_v46 }
 0x188   : > { %v990_v49 = vpop.f32.mrb[10].mxu0  ;;  %v1038_v39 = vld [vmem:[#allocation3 + $0x20] sm:$0xff] }
 0x189   : > { %v991_v50 = vadd.f32 %v990_v49, %v878_v48  ;;  %v992_v52 = vpop.f32.mrb[11].mxu0  ;;  %v1039_v48 = vld [vmem:[#allocation3 + $0x28] sm:$0xff] }
 0x18b   : > { %v1068_v53 = vpack.c.bf16 %v991_v50, %v988_v47  ;;  %v1040_v47 = vld [vmem:[#allocation3 + $0x30] sm:$0xff] }
 0x18d   : > { %1493 = vmatmul.mubr.msk.bf16.gmra.mrb[8].mxu1 %vm1074_vm1, %v1068_v53  ;;  %v1041_v53 = vld [vmem:[#allocation3 + $0x38] sm:$0xff] }
 0x18e   : > { %v995_v40 = vpop.f32.mrb[12].mxu0  ;;  %1168 = vmatprep.mubr.bf16.mxu1 %v1647_v56 }
 0x18f   : > { %v997_v54 = vpop.f32.mrb[13].mxu0  ;;  %v996_v30 = vadd.f32 %v995_v40, %v883_v51 }
 0x190   : > { %v998_v42 = vpop.f32.mrb[14].mxu0 }
 0x191   : > { %v999_v55 = vadd.f32 %v998_v42, %v888_v41  ;;  %v1000_v57 = vpop.f32.mrb[15].mxu0 }
 0x193   : > { %v1069_v58 = vpack.c.bf16 %v999_v55, %v996_v30  ;;  %v1042_v30 = vld [vmem:[#allocation3 + $0x40] sm:$0xff]  ;;  %v1043_v55 = vld [vmem:[#allocation3 + $0x48] sm:$0xff] }
 0x195   : > { %1494 = vmatmul.mubr.msk.bf16.gmra.mrb[12].mxu1 %vm1074_vm1, %v1069_v58  ;;  %v1044_v58 = vld [vmem:[#allocation3 + $0x50] sm:$0xff] }
 0x196   : > { %v1003_v59 = vpop.f32.mrb[16].mxu0  ;;  %1178 = vmatprep.mubr.bf16.mxu1 %v1647_v56 }
 0x197   : > { %v1005_v62 = vpop.f32.mrb[17].mxu0  ;;  %v1004_v61 = vadd.f32 %v1003_v59, %v893_v60 }
 0x198   : > { %v1006_v0 = vpop.f32.mrb[18].mxu0  ;;  %v1045_v62 = vld [vmem:[#allocation3 + $0x58] sm:$0xff] }
 0x199   : > { %v1007_v2 = vadd.f32 %v1006_v0, %v898_v63  ;;  %v1008_v1 = vpop.f32.mrb[19].mxu0 }
 0x19b   : > { %v1070_v3 = vpack.c.bf16 %v1007_v2, %v1004_v61 }
 0x19d   : > { %1495 = vmatmul.mubr.msk.bf16.gmra.mrb[16].mxu1 %vm1074_vm1, %v1070_v3  ;;  %v1046_v3 = vld [vmem:[#allocation3 + $0x60] sm:$0xff] }
 0x19e   : > { %v1011_v4 = vpop.f32.mrb[20].mxu0  ;;  %1188 = vmatprep.mubr.bf16.mxu1 %v1647_v56 }
 0x19f   : > { %v1013_v6 = vpop.f32.mrb[21].mxu0  ;;  %v1012_v9 = vadd.f32 %v1011_v4, %v903_v5  ;;  %v1047_v4 = vld [vmem:[#allocation3 + $0x68] sm:$0xff] }
 0x1a0   : > { %v1014_v8 = vpop.f32.mrb[22].mxu0  ;;  %v1048_v6 = vld [vmem:[#allocation3 + $0x70] sm:$0xff] }
 0x1a1   : > { %v1015_v10 = vadd.f32 %v1014_v8, %v908_v7  ;;  %v1016_v11 = vpop.f32.mrb[23].mxu0 }
 0x1a3   : > { %v1071_v12 = vpack.c.bf16 %v1015_v10, %v1012_v9  ;;  %v1049_v9 = vld [vmem:[#allocation3 + $0x78] sm:$0xff] }
 0x1a5   : > { %1496 = vmatmul.mubr.msk.bf16.gmra.mrb[20].mxu1 %vm1074_vm1, %v1071_v12 }
 0x1a6   : > { %v1019_v13 = vpop.f32.mrb[24].mxu0  ;;  %1198 = vmatprep.mubr.bf16.mxu1 %v1647_v56 }
 0x1a7   : > { %v1021_v15 = vpop.f32.mrb[25].mxu0  ;;  %v1020_v18 = vadd.f32 %v1019_v13, %v913_v14 }
 0x1a8   : > { %v1022_v17 = vpop.f32.mrb[26].mxu0  ;;  %v1050_v15 = vld [vmem:[#allocation3 + $0x80] sm:$0xff] }
 0x1a9   : > { %v1023_v19 = vadd.f32 %v1022_v17, %v918_v16  ;;  %v1024_v20 = vpop.f32.mrb[27].mxu0  ;;  %v1051_v16 = vld [vmem:[#allocation3 + $0x88] sm:$0xff] }
 0x1ab   : > { %v1072_v21 = vpack.c.bf16 %v1023_v19, %v1020_v18  ;;  %v1052_v18 = vld [vmem:[#allocation3 + $0x90] sm:$0xff] }
 0x1ad   : > { %1497 = vmatmul.mubr.msk.bf16.gmra.mrb[24].mxu1 %vm1074_vm1, %v1072_v21  ;;  %v1053_v21 = vld [vmem:[#allocation3 + $0x98] sm:$0xff] }
 0x1ae   : > { %v1027_v35 = vpop.f32.mrb[28].mxu0  ;;  %1208 = vmatprep.mubr.bf16.mxu1 %v1647_v56 }
 0x1af   : > { %v1029_v23 = vpop.f32.mrb[29].mxu0  ;;  %v1028_v25 = vadd.f32 %v1027_v35, %v923_v22 }
 0x1b0   : > { %v1030_v36 = vpop.f32.mrb[30].mxu0 }
 0x1b1   : > { %v1031_v26 = vadd.f32 %v1030_v36, %v928_v24  ;;  %v1032_v27 = vpop.f32.mrb[31].mxu0 }
 0x1b3   : > { %v1073_v37 = vpack.c.bf16 %v1031_v26, %v1028_v25  ;;  %v1054_v25 = vld [vmem:[#allocation3 + $0xa0] sm:$0xff]  ;;  %v1055_v26 = vld [vmem:[#allocation3 + $0xa8] sm:$0xff] }
 0x1b5   : > { %1498 = vmatmul.mubr.msk.bf16.gmra.mrb[28].mxu1 %vm1074_vm1, %v1073_v37  ;;  %v1056_v37 = vld [vmem:[#allocation3 + $0xb0] sm:$0xff] }
 0x250   : > { %v1140_v31 = vpop.f32.mrb[0].mxu1 }
 0x251   : > { %v1219_v33 = vadd.f32 %v1140_v31, %v1034_v28  ;;  %v1142_v34 = vpop.f32.mrb[1].mxu1  ;;  %v1057_v31 = vld [vmem:[#allocation3 + $0xb8] sm:$0xff] }
 0x252   : > { %v1220_v44 = vadd.f32 %v1142_v34, %v1035_v29  ;;  %v1144_v45 = vpop.f32.mrb[2].mxu1 }
 0x253   : > { %1251 = vst [vmem:[#allocation3] sm:$0xff] %v1219_v33  ;;  %v1221_v56 = vadd.f32 %v1144_v45, %v1036_v32  ;;  %v1146_v43 = vpop.f32.mrb[3].mxu1  ;;  %v1058_v45 = vld [vmem:[#allocation3 + $0xc0] sm:$0xff] }
 0x254   : > { %1252 = vst [vmem:[#allocation3 + $0x8] sm:$0xff] %v1220_v44  ;;  %v1222_v46 = vadd.f32 %v1146_v43, %v1037_v38 }
 0x255   : > { %1253 = vst [vmem:[#allocation3 + $0x10] sm:$0xff] %v1221_v56  ;;  %v1059_v56 = vld [vmem:[#allocation3 + $0xc8] sm:$0xff] }
 0x256   : > { %1254 = vst [vmem:[#allocation3 + $0x18] sm:$0xff] %v1222_v46  ;;  %v1060_v46 = vld [vmem:[#allocation3 + $0xd0] sm:$0xff] }
 0x258   : > { %v1150_v49 = vpop.f32.mrb[4].mxu1 }
 0x259   : > { %v1223_v50 = vadd.f32 %v1150_v49, %v1038_v39  ;;  %v1152_v52 = vpop.f32.mrb[5].mxu1  ;;  %v1061_v49 = vld [vmem:[#allocation3 + $0xd8] sm:$0xff] }
 0x25a   : > { %v1224_v40 = vadd.f32 %v1152_v52, %v1039_v48  ;;  %v1154_v51 = vpop.f32.mrb[6].mxu1 }
 0x25b   : > { %1255 = vst [vmem:[#allocation3 + $0x20] sm:$0xff] %v1223_v50  ;;  %v1225_v54 = vadd.f32 %v1154_v51, %v1040_v47  ;;  %v1156_v41 = vpop.f32.mrb[7].mxu1  ;;  %v1062_v51 = vld [vmem:[#allocation3 + $0xe0] sm:$0xff] }
 0x25c   : > { %1256 = vst [vmem:[#allocation3 + $0x28] sm:$0xff] %v1224_v40  ;;  %v1226_v42 = vadd.f32 %v1156_v41, %v1041_v53 }
 0x25d   : > { %1257 = vst [vmem:[#allocation3 + $0x30] sm:$0xff] %v1225_v54  ;;  %v1063_v54 = vld [vmem:[#allocation3 + $0xe8] sm:$0xff] }
 0x25e   : > { %1258 = vst [vmem:[#allocation3 + $0x38] sm:$0xff] %v1226_v42  ;;  %v1064_v42 = vld [vmem:[#allocation3 + $0xf0] sm:$0xff] }
 0x260   : > { %v1160_v57 = vpop.f32.mrb[8].mxu1 }
 0x261   : > { %v1227_v59 = vadd.f32 %v1160_v57, %v1042_v30  ;;  %v1162_v60 = vpop.f32.mrb[9].mxu1  ;;  %v1065_v57 = vld [vmem:[#allocation3 + $0xf8] sm:$0xff] }
 0x262   : > { %v1228_v63 = vadd.f32 %v1162_v60, %v1043_v55  ;;  %v1164_v0 = vpop.f32.mrb[10].mxu1 }
 0x263   : > { %1259 = vst [vmem:[#allocation3 + $0x40] sm:$0xff] %v1227_v59  ;;  %v1229_v61 = vadd.f32 %v1164_v0, %v1044_v58  ;;  %v1166_v2 = vpop.f32.mrb[11].mxu1  ;;  %v1287_v0 = vld [vmem:[#allocation3] sm:$0xff] (!%p1499_p6) }
 0x264   : > { %1260 = vst [vmem:[#allocation3 + $0x48] sm:$0xff] %v1228_v63  ;;  %v1230_v1 = vadd.f32 %v1166_v2, %v1045_v62  ;;  %v1289_v2 = vld [vmem:[#allocation3 + $0x10] sm:$0xff] (!%p1499_p6) }
 0x265   : > { %1261 = vst [vmem:[#allocation3 + $0x50] sm:$0xff] %v1229_v61  ;;  %v1288_v61 = vld [vmem:[#allocation3 + $0x8] sm:$0xff] (!%p1499_p6) }
 0x266   : > { %1262 = vst [vmem:[#allocation3 + $0x58] sm:$0xff] %v1230_v1  ;;  %v1319_v1 = vmul.f32 (!%p1499_p6), 0.20833333, %v1287_v0 }
 0x268   : > { %v1170_v5 = vpop.f32.mrb[12].mxu1  ;;  %1351 = vst [vmem:[#allocation7] sm:$0xff] (!%p1499_p6), %v1319_v1 }
 0x269   : > { %v1231_v7 = vadd.f32 %v1170_v5, %v1046_v3  ;;  %v1172_v8 = vpop.f32.mrb[13].mxu1  ;;  %v1320_v3 = vmul.f32 (!%p1499_p6), 0.20833333, %v1288_v61  ;;  %v1290_v5 = vld [vmem:[#allocation3 + $0x18] sm:$0xff] (!%p1499_p6) }
 0x26a   : > { %v1232_v10 = vadd.f32 %v1172_v8, %v1047_v4  ;;  %v1174_v11 = vpop.f32.mrb[14].mxu1  ;;  %v1321_v4 = vmul.f32 (!%p1499_p6), 0.20833333, %v1289_v2  ;;  %v1322_v8 = vmul.f32 (!%p1499_p6), 0.20833333, %v1290_v5 }
 0x26b   : > { %1263 = vst [vmem:[#allocation3 + $0x60] sm:$0xff] %v1231_v7  ;;  %v1233_v12 = vadd.f32 %v1174_v11, %v1048_v6  ;;  %v1176_v13 = vpop.f32.mrb[15].mxu1  ;;  %v1291_v6 = vld [vmem:[#allocation3 + $0x20] sm:$0xff] (!%p1499_p6)  ;;  %v1292_v7 = vld [vmem:[#allocation3 + $0x28] sm:$0xff] (!%p1499_p6)  ;;  %1352 = vst [vmem:[#allocation7 + $0x8] sm:$0xff] (!%p1499_p6), %v1320_v3 }
 0x26c   : > { %1264 = vst [vmem:[#allocation3 + $0x68] sm:$0xff] %v1232_v10  ;;  %v1234_v14 = vadd.f32 %v1176_v13, %v1049_v9  ;;  %1353 = vst [vmem:[#allocation7 + $0x10] sm:$0xff] (!%p1499_p6), %v1321_v4  ;;  %v1323_v9 = vmul.f32 (!%p1499_p6), 0.20833333, %v1291_v6  ;;  %v1324_v10 = vmul.f32 (!%p1499_p6), 0.20833333, %v1292_v7 }
 0x26d   : > { %1265 = vst [vmem:[#allocation3 + $0x70] sm:$0xff] %v1233_v12  ;;  %v1293_v11 = vld [vmem:[#allocation3 + $0x30] sm:$0xff] (!%p1499_p6)  ;;  %v1294_v12 = vld [vmem:[#allocation3 + $0x38] sm:$0xff] (!%p1499_p6)  ;;  %v1295_v13 = vld [vmem:[#allocation3 + $0x40] sm:$0xff] (!%p1499_p6) }
 0x26e   : > { %1266 = vst [vmem:[#allocation3 + $0x78] sm:$0xff] %v1234_v14  ;;  %1354 = vst [vmem:[#allocation7 + $0x18] sm:$0xff] (!%p1499_p6), %v1322_v8  ;;  %v1325_v14 = vmul.f32 (!%p1499_p6), 0.20833333, %v1293_v11 }
 0x26f   : > { %1355 = vst [vmem:[#allocation7 + $0x20] sm:$0xff] (!%p1499_p6), %v1323_v9  ;;  %1356 = vst [vmem:[#allocation7 + $0x28] sm:$0xff] (!%p1499_p6), %v1324_v10 }
 0x270   : > { %v1180_v17 = vpop.f32.mrb[16].mxu1  ;;  %1357 = vst [vmem:[#allocation7 + $0x30] sm:$0xff] (!%p1499_p6), %v1325_v14 }
 0x271   : > { %v1235_v19 = vadd.f32 %v1180_v17, %v1050_v15  ;;  %v1182_v20 = vpop.f32.mrb[17].mxu1  ;;  %v1326_v15 = vmul.f32 (!%p1499_p6), 0.20833333, %v1294_v12  ;;  %v1296_v17 = vld [vmem:[#allocation3 + $0x48] sm:$0xff] (!%p1499_p6) }
 0x272   : > { %v1236_v35 = vadd.f32 %v1182_v20, %v1051_v16  ;;  %v1184_v22 = vpop.f32.mrb[18].mxu1  ;;  %v1327_v16 = vmul.f32 (!%p1499_p6), 0.20833333, %v1295_v13  ;;  %v1328_v20 = vmul.f32 (!%p1499_p6), 0.20833333, %v1296_v17 }
 0x273   : > { %1267 = vst [vmem:[#allocation3 + $0x80] sm:$0xff] %v1235_v19  ;;  %v1237_v23 = vadd.f32 %v1184_v22, %v1052_v18  ;;  %v1186_v24 = vpop.f32.mrb[19].mxu1  ;;  %v1297_v18 = vld [vmem:[#allocation3 + $0x50] sm:$0xff] (!%p1499_p6)  ;;  %v1298_v19 = vld [vmem:[#allocation3 + $0x58] sm:$0xff] (!%p1499_p6)  ;;  %1358 = vst [vmem:[#allocation7 + $0x38] sm:$0xff] (!%p1499_p6), %v1326_v15 }
 0x274   : > { %1268 = vst [vmem:[#allocation3 + $0x88] sm:$0xff] %v1236_v35  ;;  %v1238_v36 = vadd.f32 %v1186_v24, %v1053_v21  ;;  %1359 = vst [vmem:[#allocation7 + $0x40] sm:$0xff] (!%p1499_p6), %v1327_v16  ;;  %v1329_v21 = vmul.f32 (!%p1499_p6), 0.20833333, %v1297_v18  ;;  %v1330_v35 = vmul.f32 (!%p1499_p6), 0.20833333, %v1298_v19 }
 0x275   : > { %1269 = vst [vmem:[#allocation3 + $0x90] sm:$0xff] %v1237_v23  ;;  %v1299_v22 = vld [vmem:[#allocation3 + $0x60] sm:$0xff] (!%p1499_p6)  ;;  %v1300_v23 = vld [vmem:[#allocation3 + $0x68] sm:$0xff] (!%p1499_p6)  ;;  %v1301_v24 = vld [vmem:[#allocation3 + $0x70] sm:$0xff] (!%p1499_p6) }
 0x276   : > { %1270 = vst [vmem:[#allocation3 + $0x98] sm:$0xff] %v1238_v36  ;;  %1360 = vst [vmem:[#allocation7 + $0x48] sm:$0xff] (!%p1499_p6), %v1328_v20  ;;  %v1331_v36 = vmul.f32 (!%p1499_p6), 0.20833333, %v1299_v22 }
 0x277   : > { %1361 = vst [vmem:[#allocation7 + $0x50] sm:$0xff] (!%p1499_p6), %v1329_v21  ;;  %1362 = vst [vmem:[#allocation7 + $0x58] sm:$0xff] (!%p1499_p6), %v1330_v35 }
 0x278   : > { %v1190_v27 = vpop.f32.mrb[20].mxu1  ;;  %1363 = vst [vmem:[#allocation7 + $0x60] sm:$0xff] (!%p1499_p6), %v1331_v36 }
 0x279   : > { %v1239_v28 = vadd.f32 %v1190_v27, %v1054_v25  ;;  %v1192_v29 = vpop.f32.mrb[21].mxu1  ;;  %v1332_v25 = vmul.f32 (!%p1499_p6), 0.20833333, %v1300_v23  ;;  %v1302_v27 = vld [vmem:[#allocation3 + $0x78] sm:$0xff] (!%p1499_p6) }
 0x27a   : > { %v1240_v32 = vadd.f32 %v1192_v29, %v1055_v26  ;;  %v1194_v33 = vpop.f32.mrb[22].mxu1  ;;  %v1333_v26 = vmul.f32 (!%p1499_p6), 0.20833333, %v1301_v24  ;;  %v1334_v29 = vmul.f32 (!%p1499_p6), 0.20833333, %v1302_v27 }
 0x27b   : > { %1271 = vst [vmem:[#allocation3 + $0xa0] sm:$0xff] %v1239_v28  ;;  %v1241_v34 = vadd.f32 %v1194_v33, %v1056_v37  ;;  %v1196_v38 = vpop.f32.mrb[23].mxu1  ;;  %v1303_v37 = vld [vmem:[#allocation3 + $0x80] sm:$0xff] (!%p1499_p6)  ;;  %v1304_v28 = vld [vmem:[#allocation3 + $0x88] sm:$0xff] (!%p1499_p6)  ;;  %1364 = vst [vmem:[#allocation7 + $0x68] sm:$0xff] (!%p1499_p6), %v1332_v25 }
 0x27c   : > { %1272 = vst [vmem:[#allocation3 + $0xa8] sm:$0xff] %v1240_v32  ;;  %v1242_v44 = vadd.f32 %v1196_v38, %v1057_v31  ;;  %1365 = vst [vmem:[#allocation7 + $0x70] sm:$0xff] (!%p1499_p6), %v1333_v26  ;;  %v1335_v31 = vmul.f32 (!%p1499_p6), 0.20833333, %v1303_v37  ;;  %v1336_v32 = vmul.f32 (!%p1499_p6), 0.20833333, %v1304_v28 }
 0x27d   : > { %1273 = vst [vmem:[#allocation3 + $0xb0] sm:$0xff] %v1241_v34  ;;  %v1305_v33 = vld [vmem:[#allocation3 + $0x90] sm:$0xff] (!%p1499_p6)  ;;  %v1306_v34 = vld [vmem:[#allocation3 + $0x98] sm:$0xff] (!%p1499_p6)  ;;  %1366 = vst [vmem:[#allocation7 + $0x78] sm:$0xff] (!%p1499_p6), %v1334_v29 }
 0x27e   : > { %1274 = vst [vmem:[#allocation3 + $0xb8] sm:$0xff] %v1242_v44  ;;  %1367 = vst [vmem:[#allocation7 + $0x80] sm:$0xff] (!%p1499_p6), %v1335_v31  ;;  %v1337_v44 = vmul.f32 (!%p1499_p6), 0.20833333, %v1305_v33 }
 0x27f   : > { %1368 = vst [vmem:[#allocation7 + $0x88] sm:$0xff] (!%p1499_p6), %v1336_v32 }
 0x280   : > { %v1200_v43 = vpop.f32.mrb[24].mxu1  ;;  %1369 = vst [vmem:[#allocation7 + $0x90] sm:$0xff] (!%p1499_p6), %v1337_v44 }
 0x281   : > { %v1243_v39 = vadd.f32 %v1200_v43, %v1058_v45  ;;  %v1202_v48 = vpop.f32.mrb[25].mxu1  ;;  %v1338_v45 = vmul.f32 (!%p1499_p6), 0.20833333, %v1306_v34 }
 0x282   : > { %v1244_v47 = vadd.f32 %v1202_v48, %v1059_v56  ;;  %v1204_v50 = vpop.f32.mrb[26].mxu1  ;;  %v1307_v38 = vld [vmem:[#allocation3 + $0xa0] sm:$0xff] (!%p1499_p6) }
 0x283   : > { %1275 = vst [vmem:[#allocation3 + $0xc0] sm:$0xff] %v1243_v39  ;;  %v1245_v52 = vadd.f32 %v1204_v50, %v1060_v46  ;;  %v1206_v53 = vpop.f32.mrb[27].mxu1  ;;  %v1339_v56 = vmul.f32 (!%p1499_p6), 0.20833333, %v1307_v38  ;;  %v1308_v43 = vld [vmem:[#allocation3 + $0xa8] sm:$0xff] (!%p1499_p6)  ;;  %1370 = vst [vmem:[#allocation7 + $0x98] sm:$0xff] (!%p1499_p6), %v1338_v45 }
 0x284   : > { %1276 = vst [vmem:[#allocation3 + $0xc8] sm:$0xff] %v1244_v47  ;;  %v1246_v40 = vadd.f32 %v1206_v53, %v1061_v49  ;;  %v1309_v46 = vld [vmem:[#allocation3 + $0xb0] sm:$0xff] (!%p1499_p6)  ;;  %v1340_v48 = vmul.f32 (!%p1499_p6), 0.20833333, %v1308_v43 }
 0x285   : > { %1277 = vst [vmem:[#allocation3 + $0xd0] sm:$0xff] %v1245_v52  ;;  %v1310_v39 = vld [vmem:[#allocation3 + $0xb8] sm:$0xff] (!%p1499_p6)  ;;  %1371 = vst [vmem:[#allocation7 + $0xa0] sm:$0xff] (!%p1499_p6), %v1339_v56  ;;  %v1341_v49 = vmul.f32 (!%p1499_p6), 0.20833333, %v1309_v46 }
 0x286   : > { %1278 = vst [vmem:[#allocation3 + $0xd8] sm:$0xff] %v1246_v40  ;;  %v1342_v47 = vmul.f32 (!%p1499_p6), 0.20833333, %v1310_v39  ;;  %1372 = vst [vmem:[#allocation7 + $0xa8] sm:$0xff] (!%p1499_p6), %v1340_v48 }
 0x287   : > { %1373 = vst [vmem:[#allocation7 + $0xb0] sm:$0xff] (!%p1499_p6), %v1341_v49 }
 0x288   : > { %v1210_v41 = vpop.f32.mrb[28].mxu1  ;;  %1286 = sbr.rel (%p1499_p6) target bundleno = 665 (0x299), region = 48  ;;  %1374 = vst [vmem:[#allocation7 + $0xb8] sm:$0xff] (!%p1499_p6), %v1342_v47 }
 0x289   : > { %v1247_v30 = vadd.f32 %v1210_v41, %v1062_v51  ;;  %v1212_v55 = vpop.f32.mrb[29].mxu1 }
 0x28a   : > { %v1248_v58 = vadd.f32 %v1212_v55, %v1063_v54  ;;  %v1214_v59 = vpop.f32.mrb[30].mxu1  ;;  %v1311_v50 = vld [vmem:[#allocation3 + $0xc0] sm:$0xff] (!%p1499_p6) }
 0x28b   : > { %1279 = vst [vmem:[#allocation3 + $0xe0] sm:$0xff] %v1247_v30  ;;  %v1249_v60 = vadd.f32 %v1214_v59, %v1064_v42  ;;  %v1216_v62 = vpop.f32.mrb[31].mxu1  ;;  %v1312_v52 = vld [vmem:[#allocation3 + $0xc8] sm:$0xff] (!%p1499_p6)  ;;  %v1343_v40 = vmul.f32 (!%p1499_p6), 0.20833333, %v1311_v50 }
 0x28c   : > { %1280 = vst [vmem:[#allocation3 + $0xe8] sm:$0xff] %v1248_v58  ;;  %v1250_v63 = vadd.f32 %v1216_v62, %v1065_v57  ;;  %v1313_v53 = vld [vmem:[#allocation3 + $0xd0] sm:$0xff] (!%p1499_p6)  ;;  %v1344_v51 = vmul.f32 (!%p1499_p6), 0.20833333, %v1312_v52 }
 0x28d   : > { %1281 = vst [vmem:[#allocation3 + $0xf0] sm:$0xff] %v1249_v60  ;;  %v1345_v54 = vmul.f32 (!%p1499_p6), 0.20833333, %v1313_v53  ;;  %v1314_v41 = vld [vmem:[#allocation3 + $0xd8] sm:$0xff] (!%p1499_p6)  ;;  %1375 = vst [vmem:[#allocation7 + $0xc0] sm:$0xff] (!%p1499_p6), %v1343_v40 }
 0x28e   : > { %1282 = vst [vmem:[#allocation3 + $0xf8] sm:$0xff] %v1250_v63  ;;  %1376 = vst [vmem:[#allocation7 + $0xc8] sm:$0xff] (!%p1499_p6), %v1344_v51  ;;  %v1346_v55 = vmul.f32 (!%p1499_p6), 0.20833333, %v1314_v41 }
 0x28f   : > { %1377 = vst [vmem:[#allocation7 + $0xd0] sm:$0xff] %v1345_v54 }
 0x290   : > { %1378 = vst [vmem:[#allocation7 + $0xd8] sm:$0xff] %v1346_v55 }
 0x292   : > { %v1315_v42 = vld [vmem:[#allocation3 + $0xe0] sm:$0xff] }
 0x293   : > { %v1316_v30 = vld [vmem:[#allocation3 + $0xe8] sm:$0xff]  ;;  %v1347_v57 = vmul.f32 0.20833333, %v1315_v42 }
 0x294   : > { %v1348_v58 = vmul.f32 0.20833333, %v1316_v30  ;;  %v1317_v59 = vld [vmem:[#allocation3 + $0xf0] sm:$0xff] }
 0x295   : > { %v1318_v60 = vld [vmem:[#allocation3 + $0xf8] sm:$0xff]  ;;  %1379 = vst [vmem:[#allocation7 + $0xe0] sm:$0xff] %v1347_v57  ;;  %v1349_v62 = vmul.f32 0.20833333, %v1317_v59 }
 0x296   : > { %1380 = vst [vmem:[#allocation7 + $0xe8] sm:$0xff] %v1348_v58  ;;  %v1350_v63 = vmul.f32 0.20833333, %v1318_v60 }
 0x297   : > { %1381 = vst [vmem:[#allocation7 + $0xf0] sm:$0xff] %v1349_v62 }
 0x298   : > { %1382 = vst [vmem:[#allocation7 + $0xf8] sm:$0xff] %v1350_v63 }
 0x299 PF: > { %p2015_p8 = scmp.eq.s32.totalorder %s1475_s18, 2  ;;  %s1648_s14 = smov [#allocation7]  }
 0x29a   : > { %s1393_s22 = sshll.u32 %s1648_s14, 4  ;;  %s1394_s22 = int_to_ptr.vmem [resolvable:$true] %s1393_s22 }
 0x29b   : > { %s1585_s20 = scalar_lea.vmem %s1394_s22, 4096  ;;  %p1592_p13 = scmp.lt.s32.totalorder %s1394_s22, %s1394_s22 }
 0x29c   : > { %p1586_p10 = scmp.ne.s32.totalorder %s1394_s22, %s1585_s20  ;;  %p1593_p0 = scmp.lt.s32.totalorder %s1585_s20, %s1585_s20 }
 0x29e   : > { %p1587_p11 = pnand %p1586_p10, %p2015_p8  ;;  %p1594_p1 = por %p1593_p0, %p1592_p13 }
 0x2a0   : > { %p1588_p12 = pneg %p1587_p11 }
 0x2a2   : > { %p1595_p2 = pnand %p1594_p1, %p1588_p12 }
 0x2a4   : > { %1598 = shalt.err (!%p1595_p2)
}
 0x2a5   : > { %s1599_s18 = scalar_lea.hbm %s2054_s4, 4096 }
 0x2a6   : > { %p1600_p5 = scmp.ne.s32.totalorder %s2054_s4, %s1599_s18  ;;  %p1605_p3 = scmp.lt.u32.totalorder %s1599_s18, %s2054_s4 }
 0x2a8   : > { %p1601_p7 = pnand %p1600_p5, %p2015_p8 }
 0x2aa   : > { %p1602_p9 = pneg %p1601_p7 }
 0x2ac   : > { %p1607_p4 = pnand %p1605_p3, %p1602_p9 }
 0x2ae   : > { %1610 = shalt.err (!%p1607_p4)
}
 0x2af   : > { %s1649_s28 = smov 256   ;;  %s1650_s29 = smov 16  }
 0x2b0   : > { %1510 = dma.vmem_to_hbm [thread:$0]  (%p2015_p8), %s1394_s22, 4096, %s2054_s4, [#allocation6], %s1649_s28, %s1649_s28, %s1650_s29  }
 0x2b1   : > { %1628 = dma.done.wait (%p2015_p8), [#allocation6], 4096  }
 0x2b2   : > { %1630 = vsyncadd (%p2015_p8), [#allocation6], 4294963200 }
 0x2b3 PF: > { %s16_s17 = sadd.s32 1, %s1641_s17   ;;  %s2064_s15 = smov %s1637_s16 }
 0x2b4   : > { %p13_p6 = scmp.ge.s32.totalorder %s16_s17, 5   ;;  %s2065_s16 = smov %s2067_s19 }
 0x2b6   :  { %15 = sbr.rel (!%p13_p6) target bundleno = 3 (0x3), region = 84 }
 0x2bd   :  { %1409 = vsyncpa [#allocation5], 1 }
 0x2be   :  { %1411 = vsyncpa [#allocation5 + $0x1], 1 }
 0x2bf   :  { %1412 = vsyncpa [#allocation6], 1 }
 0x2c0   :  { %1414 = vsyncpa [#allocation6 + $0x1], 1 }

</bundles_post_ra>
